<compile_context>
chip_gen: v5e
topology: v5e:2x2
jax: 0.10.0
libtpu: 0.0.40
codegen_flags: <defaults>
</compile_context>

<pallas_src>
import functools

import jax
import jax.numpy as jnp
from jax import lax
from jax.experimental import pallas as pl
from jax.experimental.pallas import tpu as pltpu


def _fdn_kernel(x_ref, wide_ref, w_ref, gavg_ref, o_ref, *, eps):
    # x_ref:    (1, Cn, HW)      input, channels-major (flattened NCHW)
    # wide_ref: (1, H+2, W, K)   dx-im2col'd + ones-augmented label features, K = 3*Cl + 1
    # w_ref:    (3, K, 2*Cn)     fused [conv_gamma | conv_beta] weights per dy; row K-1 of
    #                            w_ref[0] carries [bias_gamma + 1 | bias_beta]
    # gavg_ref: (Cn, Cn)         group-averaging matrix (1/(Cg*H*W) if same group, else 0)
    # o_ref:    (1, Cn, HW)
    _, Cn, HW = x_ref.shape
    _, Hp, W, K = wide_ref.shape
    H = Hp - 2

    # ---- GroupNorm(32, Cn, affine=False); statistics in f32 ----
    xf = x_ref[0].astype(jnp.float32)                              # (Cn, HW), lane-dense
    s = jnp.sum(xf, axis=-1, keepdims=True)                        # (Cn, 1)
    s2 = jnp.sum(xf * xf, axis=-1, keepdims=True)                  # (Cn, 1)
    # one fused group-mixing matmul -> [mean | E[x^2]] (single MXU push/pop)
    stats = jnp.dot(gavg_ref[...], jnp.concatenate([s, s2], axis=-1),
                    preferred_element_type=jnp.float32)            # (Cn, 2)
    mean_c = stats[:, 0:1]
    var_c = stats[:, 1:2] - mean_c * mean_c
    inv_c = lax.rsqrt(var_c + eps)
    normalized = (xf - mean_c) * inv_c                             # (Cn, HW)

    # ---- fused conv_gamma/conv_beta: 3 MXU matmuls (one per dy), K = 3*Cl + 1 ----
    # im2col over dx (plus the ones bias channel) was built in the wrapper, so the only
    # in-kernel prep is a free leading-axis slice + layout-preserving reshape per dy.
    wide = wide_ref[0]                                             # (H+2, W, K), bf16
    acc = jnp.dot(wide[0:H].reshape(HW, K), w_ref[0],
                  preferred_element_type=jnp.float32)
    acc = acc + jnp.dot(wide[1:1 + H].reshape(HW, K), w_ref[1],
                        preferred_element_type=jnp.float32)
    acc = acc + jnp.dot(wide[2:2 + H].reshape(HW, K), w_ref[2],
                        preferred_element_type=jnp.float32)        # (HW, 2Cn), f32

    gb = jnp.transpose(acc)                                        # (2Cn, HW): one XLU transpose
    g1 = gb[:Cn, :]                                                # = 1 + gamma (bias & +1 folded)
    beta = gb[Cn:, :]
    o_ref[0] = (normalized * g1 + beta).astype(o_ref.dtype)


def fdn_forward(x_nchw, lf_nchw, wg, bg, wb, bb, *, num_groups=32, eps=1e-5,
                conv_dtype=jnp.bfloat16):
    """FDN forward.  x_nchw: (N, norm_nc, H, W), lf_nchw: (N, label_nc, H, W).
    wg/wb: torch-layout conv weights (Cout, Cin, 3, 3); bg/bb: (Cout,).
    conv_dtype: dtype of the gamma/beta conv MXU operands (bf16 recommended; f32 acc)."""
    N, Cn, H, W = x_nchw.shape
    Cl = lf_nchw.shape[1]
    assert lf_nchw.shape[2:] == (H, W)
    assert Cn % num_groups == 0
    Cg = Cn // num_groups
    HW = H * W
    K = 3 * Cl + 1                       # 3 dx taps * Cl channels + 1 constant-ones bias channel

    x = x_nchw.reshape(N, Cn, HW)        # free reshape; stays in NCHW memory

    # ---- label features: NHWC, SAME pad, dx-im2col, ones bias channel (all on the SMALL tensor)
    lf = jnp.transpose(lf_nchw, (0, 2, 3, 1))                       # (N, H, W, Cl)
    lfp = jnp.pad(lf, ((0, 0), (1, 1), (1, 1), (0, 0)))             # (N, H+2, W+2, Cl)
    wide = jnp.concatenate(
        [lfp[:, :, 0:W, :], lfp[:, :, 1:1 + W, :], lfp[:, :, 2:2 + W, :],
         jnp.ones((N, H + 2, W, 1), lfp.dtype)], axis=-1)           # (N, H+2, W, K)
    wide = wide.astype(conv_dtype)

    # ---- fused conv weights: OIHW -> (dy, dx*Cl+ci, o); gamma|beta concat on Cout.
    #      The bias (and the folded +1 for gamma) rides the MXU via the ones channel of w[0].
    def to_dyk(w_oihw):
        return jnp.transpose(w_oihw, (2, 3, 1, 0)).reshape(3, 3 * Cl, -1)
    w = jnp.concatenate([to_dyk(wg), to_dyk(wb)], axis=-1)          # (3, 3Cl, 2Cn)
    bias_row0 = jnp.concatenate([bg + 1.0, bb])[None, None, :]      # (1, 1, 2Cn)
    bias_rows = jnp.concatenate(
        [bias_row0, jnp.zeros((2, 1, 2 * Cn), w.dtype)], axis=0)    # (3, 1, 2Cn)
    w = jnp.concatenate([w, bias_rows], axis=1).astype(conv_dtype)  # (3, K, 2Cn)

    # group-averaging matrix (hoisted; constant index_map -> stays resident in VMEM)
    ch = jnp.arange(Cn)
    same_group = (ch[:, None] // Cg) == (ch[None, :] // Cg)
    gavg = same_group.astype(jnp.float32) / jnp.float32(Cg * HW)    # (Cn, Cn)

    kernel = functools.partial(_fdn_kernel, eps=eps)
    out = pl.pallas_call(
        kernel,
        out_shape=jax.ShapeDtypeStruct((N, Cn, HW), x_nchw.dtype),
        grid_spec=pltpu.PrefetchScalarGridSpec(
            num_scalar_prefetch=0,
            grid=(N,),
            in_specs=[
                pl.BlockSpec((1, Cn, HW), lambda n: (n, 0, 0)),
                pl.BlockSpec((1, H + 2, W, K), lambda n: (n, 0, 0, 0)),
                pl.BlockSpec((3, K, 2 * Cn), lambda n: (0, 0, 0)),
                pl.BlockSpec((Cn, Cn), lambda n: (0, 0)),
            ],
            out_specs=pl.BlockSpec((1, Cn, HW), lambda n: (n, 0, 0)),
        ),
        compiler_params=pltpu.CompilerParams(
            dimension_semantics=("parallel",),   # v7x: shard batch steps over both TCs
            # Harmless at demo sizes; raise toward ~96-112 MiB on v5e/v6e at production
            # shapes (bigger H tiles / deeper pipelining), keep <= 48 MiB on v7x.
            vmem_limit_bytes=48 * 1024 * 1024,
        ),
    )(x, wide, w, gavg)
    return out.reshape(N, Cn, H, W)


def fdn_reference(x, lf, wg, bg, wb, bb, *, num_groups=32, eps=1e-5):
    """Plain-JAX reference matching the PyTorch module semantics."""
    N, C, H, W = x.shape
    xr = x.reshape(N, num_groups, -1)
    mean = jnp.mean(xr, axis=-1, keepdims=True)
    var = jnp.var(xr, axis=-1, keepdims=True)
    normalized = ((xr - mean) / jnp.sqrt(var + eps)).reshape(N, C, H, W)

    dn = ('NCHW', 'OIHW', 'NCHW')
    gamma = lax.conv_general_dilated(lf, wg, (1, 1), 'SAME', dimension_numbers=dn,
                                     precision=lax.Precision.HIGHEST)
    gamma = gamma + bg[None, :, None, None]
    beta = lax.conv_general_dilated(lf, wb, (1, 1), 'SAME', dimension_numbers=dn,
                                    precision=lax.Precision.HIGHEST)
    beta = beta + bb[None, :, None, None]
    return normalized * (1.0 + gamma) + beta


if __name__ == "__main__":
    # small shapes consistent with FDN(norm_nc=64, label_nc=32); GroupNorm needs Cn % 32 == 0
    N, norm_nc, label_nc, H, W = 2, 64, 32, 16, 16

    key = jax.random.PRNGKey(0)
    k1, k2, k3, k4, k5, k6 = jax.random.split(key, 6)
    x = jax.random.normal(k1, (N, norm_nc, H, W), jnp.float32)
    lf = jax.random.normal(k2, (N, label_nc, H, W), jnp.float32)

    w_scale = 1.0 / (3.0 * jnp.sqrt(jnp.float32(label_nc * 9)))   # deterministic synthetic init
    wg = w_scale * jax.random.normal(k3, (norm_nc, label_nc, 3, 3), jnp.float32)
    bg = 0.05 * jax.random.normal(k4, (norm_nc,), jnp.float32)
    wb = w_scale * jax.random.normal(k5, (norm_nc, label_nc, 3, 3), jnp.float32)
    bb = 0.05 * jax.random.normal(k6, (norm_nc,), jnp.float32)

    out = jax.block_until_ready(fdn_forward(x, lf, wg, bg, wb, bb))
    assert out.shape == (N, norm_nc, H, W)

    # (1) Kernel-math check: reference fed the SAME bf16-rounded conv operands the kernel
    #     uses (bf16 products are exact in f32, accumulation is f32) -> should match tightly.
    q = lambda a: a.astype(jnp.bfloat16).astype(jnp.float32)
    ref_q = fdn_reference(x, q(lf), q(wg), q(bg + 1.0) - 1.0, q(wb), q(bb))
    err_q = float(jnp.max(jnp.abs(out - ref_q)))
    assert err_q < 1e-3, f"kernel-math max abs error too large: {err_q}"

    # (2) Exact module semantics (f32 HIGHEST-precision conv). Looser tolerance documents the
    #     deliberate bf16 cast of the gamma/beta conv operands (expected max err ~1e-2).
    ref = fdn_reference(x, lf, wg, bg, wb, bb)
    err = float(jnp.max(jnp.abs(out - ref)))
    assert err < 4e-2, f"max abs error vs exact reference too large: {err}"

    print("KERNEL_OK")
</pallas_src>

<mosaic_0001>
module attributes {stable_mosaic.version = 11 : i64} {
  func.func @_fdn_kernel(%arg0: i32, %arg1: memref<1x64x256xf32, #tpu.memory_space<vmem>>, %arg2: memref<1x18x16x97xbf16, #tpu.memory_space<vmem>>, %arg3: memref<3x97x128xbf16, #tpu.memory_space<vmem>>, %arg4: memref<64x64xf32, #tpu.memory_space<vmem>>, %arg5: memref<1x64x256xf32, #tpu.memory_space<vmem>>) attributes {dimension_semantics = [#tpu.dimension_semantics<parallel>], iteration_bounds = array<i64: 2>, scalar_prefetch = 0 : i64, scratch_operands = 0 : i64, tpu.core_type = #tpu.core_type<tc>, window_params = [{transform_indices = @transform_0, window_bounds = array<i64: 1, 64, 256>}, {transform_indices = @transform_1, window_bounds = array<i64: 1, 18, 16, 97>}, {pipeline_mode = #tpu.pipeline_mode<synchronous>, transform_indices = @transform_2, window_bounds = array<i64: 3, 97, 128>}, {pipeline_mode = #tpu.pipeline_mode<synchronous>, transform_indices = @transform_3, window_bounds = array<i64: 64, 64>}, {transform_indices = @transform_4, window_bounds = array<i64: 1, 64, 256>}]} {
    %c0 = arith.constant 0 : index
    %c0_0 = arith.constant 0 : index
    %c0_1 = arith.constant 0 : index
    %0 = vector.load %arg1[%c0, %c0_0, %c0_1] : memref<1x64x256xf32, #tpu.memory_space<vmem>>, vector<1x64x256xf32>
    %1 = vector.shape_cast %0 : vector<1x64x256xf32> to vector<64x256xf32>
    %cst = arith.constant dense<0.000000e+00> : vector<64xf32>
    %2 = vector.multi_reduction <add>, %1, %cst [1] : vector<64x256xf32> to vector<64xf32>
    %3 = vector.shape_cast %2 : vector<64xf32> to vector<64x1xf32>
    %4 = arith.mulf %1, %1 : vector<64x256xf32>
    %cst_2 = arith.constant dense<0.000000e+00> : vector<64xf32>
    %5 = vector.multi_reduction <add>, %4, %cst_2 [1] : vector<64x256xf32> to vector<64xf32>
    %6 = vector.shape_cast %5 : vector<64xf32> to vector<64x1xf32>
    %c0_3 = arith.constant 0 : index
    %c0_4 = arith.constant 0 : index
    %7 = vector.load %arg4[%c0_3, %c0_4] : memref<64x64xf32, #tpu.memory_space<vmem>>, vector<64x64xf32>
    %8 = tpu.concatenate %3, %6 in 1 : vector<64x1xf32>, vector<64x1xf32> -> vector<64x2xf32>
    %cst_5 = arith.constant dense<0.000000e+00> : vector<64x2xf32>
    %9 = tpu.matmul %7, %8, %cst_5 {dimension_numbers = #tpu.dot_dimension_numbers<[1], [0], [0], [1], [0, 0, 1, 1], [], []>} : vector<64x64xf32>, vector<64x2xf32>, vector<64x2xf32> -> vector<64x2xf32>
    %10 = vector.extract_strided_slice %9 {offsets = [0, 0], sizes = [64, 1], strides = [1, 1]} : vector<64x2xf32> to vector<64x1xf32>
    %11 = vector.extract_strided_slice %9 {offsets = [0, 1], sizes = [64, 1], strides = [1, 1]} : vector<64x2xf32> to vector<64x1xf32>
    %12 = arith.mulf %10, %10 : vector<64x1xf32>
    %13 = arith.subf %11, %12 : vector<64x1xf32>
    %cst_6 = arith.constant 9.99999974E-6 : f32
    %14 = vector.broadcast %cst_6 : f32 to vector<64x1xf32>
    %15 = arith.addf %13, %14 : vector<64x1xf32>
    %16 = math.rsqrt %15 : vector<64x1xf32>
    %17 = vector.broadcast %10 : vector<64x1xf32> to vector<64x256xf32>
    %18 = arith.subf %1, %17 : vector<64x256xf32>
    %19 = vector.broadcast %16 : vector<64x1xf32> to vector<64x256xf32>
    %20 = arith.mulf %18, %19 : vector<64x256xf32>
    %c0_7 = arith.constant 0 : index
    %c0_8 = arith.constant 0 : index
    %c0_9 = arith.constant 0 : index
    %c0_10 = arith.constant 0 : index
    %21 = vector.load %arg2[%c0_7, %c0_8, %c0_9, %c0_10] : memref<1x18x16x97xbf16, #tpu.memory_space<vmem>>, vector<1x18x16x97xbf16>
    %22 = vector.shape_cast %21 : vector<1x18x16x97xbf16> to vector<18x16x97xbf16>
    %23 = vector.extract_strided_slice %22 {offsets = [0, 0, 0], sizes = [16, 16, 97], strides = [1, 1, 1]} : vector<18x16x97xbf16> to vector<16x16x97xbf16>
    %24 = vector.shape_cast %23 : vector<16x16x97xbf16> to vector<256x97xbf16>
    %c0_11 = arith.constant 0 : index
    %c0_12 = arith.constant 0 : index
    %c0_13 = arith.constant 0 : index
    %25 = vector.load %arg3[%c0_11, %c0_12, %c0_13] : memref<3x97x128xbf16, #tpu.memory_space<vmem>>, vector<1x97x128xbf16>
    %26 = vector.shape_cast %25 : vector<1x97x128xbf16> to vector<97x128xbf16>
    %cst_14 = arith.constant dense<0.000000e+00> : vector<256x128xf32>
    %27 = tpu.matmul %24, %26, %cst_14 {dimension_numbers = #tpu.dot_dimension_numbers<[1], [0], [0], [1], [0, 0, 1, 1], [], []>} : vector<256x97xbf16>, vector<97x128xbf16>, vector<256x128xf32> -> vector<256x128xf32>
    %28 = vector.extract_strided_slice %22 {offsets = [1, 0, 0], sizes = [16, 16, 97], strides = [1, 1, 1]} : vector<18x16x97xbf16> to vector<16x16x97xbf16>
    %29 = vector.shape_cast %28 : vector<16x16x97xbf16> to vector<256x97xbf16>
    %c1 = arith.constant 1 : index
    %c0_15 = arith.constant 0 : index
    %c0_16 = arith.constant 0 : index
    %30 = vector.load %arg3[%c1, %c0_15, %c0_16] : memref<3x97x128xbf16, #tpu.memory_space<vmem>>, vector<1x97x128xbf16>
    %31 = vector.shape_cast %30 : vector<1x97x128xbf16> to vector<97x128xbf16>
    %cst_17 = arith.constant dense<0.000000e+00> : vector<256x128xf32>
    %32 = tpu.matmul %29, %31, %cst_17 {dimension_numbers = #tpu.dot_dimension_numbers<[1], [0], [0], [1], [0, 0, 1, 1], [], []>} : vector<256x97xbf16>, vector<97x128xbf16>, vector<256x128xf32> -> vector<256x128xf32>
    %33 = arith.addf %27, %32 : vector<256x128xf32>
    %34 = vector.extract_strided_slice %22 {offsets = [2, 0, 0], sizes = [16, 16, 97], strides = [1, 1, 1]} : vector<18x16x97xbf16> to vector<16x16x97xbf16>
    %35 = vector.shape_cast %34 : vector<16x16x97xbf16> to vector<256x97xbf16>
    %c2 = arith.constant 2 : index
    %c0_18 = arith.constant 0 : index
    %c0_19 = arith.constant 0 : index
    %36 = vector.load %arg3[%c2, %c0_18, %c0_19] : memref<3x97x128xbf16, #tpu.memory_space<vmem>>, vector<1x97x128xbf16>
    %37 = vector.shape_cast %36 : vector<1x97x128xbf16> to vector<97x128xbf16>
    %cst_20 = arith.constant dense<0.000000e+00> : vector<256x128xf32>
    %38 = tpu.matmul %35, %37, %cst_20 {dimension_numbers = #tpu.dot_dimension_numbers<[1], [0], [0], [1], [0, 0, 1, 1], [], []>} : vector<256x97xbf16>, vector<97x128xbf16>, vector<256x128xf32> -> vector<256x128xf32>
    %39 = arith.addf %33, %38 : vector<256x128xf32>
    %40 = tpu.transpose %39, [1, 0] : vector<256x128xf32> -> vector<128x256xf32>
    %41 = vector.extract_strided_slice %40 {offsets = [0, 0], sizes = [64, 256], strides = [1, 1]} : vector<128x256xf32> to vector<64x256xf32>
    %42 = vector.extract_strided_slice %40 {offsets = [64, 0], sizes = [64, 256], strides = [1, 1]} : vector<128x256xf32> to vector<64x256xf32>
    %43 = arith.mulf %20, %41 : vector<64x256xf32>
    %44 = arith.addf %43, %42 : vector<64x256xf32>
    %c0_21 = arith.constant 0 : index
    %c0_22 = arith.constant 0 : index
    %c0_23 = arith.constant 0 : index
    %45 = vector.load %arg5[%c0_21, %c0_22, %c0_23] : memref<1x64x256xf32, #tpu.memory_space<vmem>>, vector<1x64x256xf32>
    %46 = vector.shape_cast %45 : vector<1x64x256xf32> to vector<64x256xf32>
    %47 = vector.shape_cast %44 : vector<64x256xf32> to vector<1x64x256xf32>
    tpu.vector_store %arg5[%c0_21, %c0_22, %c0_23], %47 {strides = array<i32>} : memref<1x64x256xf32, #tpu.memory_space<vmem>>, vector<1x64x256xf32>,
    return
  }
  func.func @transform_0(%arg0: i32) -> (i32, i32, i32) {
    %c0_i32 = arith.constant 0 : i32
    %c0_i32_0 = arith.constant 0 : i32
    %c0_i32_1 = arith.constant 0 : i32
    return %arg0, %c0_i32, %c0_i32_0 : i32, i32, i32
  }
  func.func @transform_1(%arg0: i32) -> (i32, i32, i32, i32) {
    %c0_i32 = arith.constant 0 : i32
    %c0_i32_0 = arith.constant 0 : i32
    %c0_i32_1 = arith.constant 0 : i32
    %c0_i32_2 = arith.constant 0 : i32
    return %arg0, %c0_i32, %c0_i32_0, %c0_i32_1 : i32, i32, i32, i32
  }
  func.func @transform_2(%arg0: i32) -> (i32, i32, i32) {
    %c0_i32 = arith.constant 0 : i32
    %c0_i32_0 = arith.constant 0 : i32
    %c0_i32_1 = arith.constant 0 : i32
    %c0_i32_2 = arith.constant 0 : i32
    return %c0_i32, %c0_i32_0, %c0_i32_1 : i32, i32, i32
  }
  func.func @transform_3(%arg0: i32) -> (i32, i32) {
    %c0_i32 = arith.constant 0 : i32
    %c0_i32_0 = arith.constant 0 : i32
    %c0_i32_1 = arith.constant 0 : i32
    return %c0_i32, %c0_i32_0 : i32, i32
  }
  func.func @transform_4(%arg0: i32) -> (i32, i32, i32) {
    %c0_i32 = arith.constant 0 : i32
    %c0_i32_0 = arith.constant 0 : i32
    %c0_i32_1 = arith.constant 0 : i32
    return %arg0, %c0_i32, %c0_i32_0 : i32, i32, i32
  }
}

</mosaic_0001>

<bundles_post_ra>
// kernel: tpu_custom_call.1
= control target key start
LH: loop header
LB: loop body
LE: loop exit
PB: predicated region body
PF: predicated region fallthrough
CT: control target
= control target key end

     0   :  { %s2781_s0 = inlined_call_operand.hbm [shape: f32[2,64,256], index: 0, kind: input, shape index: {}]   ;;  %s2782_s1 = inlined_call_operand.hbm [shape: bf16[2,18,16,97], index: 1, kind: input, shape index: {}]   ;;  %s2783_s2 = inlined_call_operand.hbm [shape: bf16[3,97,128], index: 2, kind: input, shape index: {}]   ;;  %s2784_s3 = inlined_call_operand.hbm [shape: f32[64,64], index: 3, kind: input, shape index: {}]   ;;  %s2785_s4 = inlined_call_operand.hbm [shape: f32[2,64,256], index: 4, kind: output, shape index: {}]  }
   0x1   :  { %2788 = sst [smem:[#allocation17_spill]] %s2781_s0 }
   0x2   :  { %2789 = sst [smem:[#allocation18_spill]] %s2783_s2 }
   0x3   :  { %2790 = sst [smem:[#allocation19_spill]] %s2784_s3 }
   0x4   :  { %9 = vsyncpa [#allocation3], 0 }
   0x5   :  { %11 = vsyncpa [#allocation3 + $0x1], 0 }
   0x6   :  { %12 = vsyncpa [#allocation6], 0 }
   0x7   :  { %14 = vsyncpa [#allocation6 + $0x1], 0 }
   0x8   :  { %15 = vsyncpa [#allocation9], 0 }
   0x9   :  { %16 = vsyncpa [#allocation4], 0 }
   0xa   :  { %18 = vsyncpa [#allocation4 + $0x1], 0  ;;  %s2234_s15 = smov 0   ;;  %s2236_s16 = smov 0  }
   0xb   :  { %s2238_s17 = smov 0   ;;  %s2240_s18 = smov 0  }
   0xc LB: > { %s2255_s19 = sadd.s32 4294967295, %s2194_s18   ;;  %s1598_s20 = sadd.s32 4294967294, %s2194_s18   ;;  %s2194_s18 = sphi %s2240_s18, %s2807_s18   ;;  %s2190_s17 = sphi %s2238_s17, %s2806_s17   ;;  %s2186_s16 = sphi %s2236_s16, %s2805_s16   ;;  %s2182_s15 = sphi %s2234_s15, %s2804_s15  }
   0xd   : > { %p44_p0 = scmp.ne.s32.totalorder %s2186_s16, %s2182_s15  ;;  %p45_p1 = scmp.eq.s32.totalorder %s2255_s19, 0 }
   0xe   : > { %p136_p2 = scmp.eq.s32.totalorder %s2255_s19, 1  ;;  %p142_p3 = scmp.eq.s32.totalorder %s1598_s20, 1 }
   0xf   : > { %p2264_p4 = por %p45_p1, %p44_p0  ;;  %p1599_p5 = scmp.ge.s32.totalorder %s2194_s18, 1 }
  0x10   : > { %p2269_p6 = por %p142_p3, %p44_p0  ;;  %p149_p7 = scmp.lt.s32.totalorder %s2194_s18, 3 }
  0x11   : > { %s2793_s2 = sld [smem:[#allocation18_spill]]  ;;  %s2196_s27 = smov [#allocation7]  }
  0x12   : > { %p2277_p8 = pnand %p1599_p5, %p149_p7  ;;  %s162_s28 = sshll.u32 %s2196_s27, 4  ;;  %s163_s28 = int_to_ptr.vmem [resolvable:$true] %s162_s28 }
  0x13   : > { %s2795_s3 = sld [smem:[#allocation19_spill]]  ;;  %s2786_s6 = smov 64  }
  0x14   : > { %p1893_p9 = pneg %p2277_p8  ;;  %s2787_s7 = smov 4  }
  0x15   : > { %s2199_s8 = smov [#allocation8]   ;;  %s2200_s10 = smov 128  }
  0x16   : > { %p1894_p10 = pnand %p1893_p9, %p45_p1  ;;  %s176_s9 = sshll.u32 %s2199_s8, 4  ;;  %s177_s9 = int_to_ptr.vmem [resolvable:$true] %s176_s9 }
  0x17   : > { %s160_s25 = sshll.u32 %s2793_s2, 4  ;;  %s2201_s11 = smov 8   ;;  %s161_s25 = int_to_ptr.hbm [resolvable:$true] %s160_s25 }
  0x18   : > { %1896 = dma.hbm_to_vmem [thread:$0]  (!%p1894_p10), %s161_s25, 2496, %s163_s28, [#allocation6], %s2786_s6, %s2786_s6, %s2787_s7  }
  0x19   : > { %s174_s5 = sshll.u32 %s2795_s3, 4  ;;  %s2293_s12 = sadd.s32 1, %s2194_s18   ;;  %s175_s5 = int_to_ptr.hbm [resolvable:$true] %s174_s5 }
  0x1a   : > { %1899 = dma.hbm_to_vmem [thread:$0]  (!%p1894_p10), %s175_s5, 1024, %s177_s9, [#allocation9], %s2200_s10, %s2200_s10, %s2201_s11  }
  0x1b   : > { %s28_s13 = ssub.s32 %s2194_s18, %s2293_s12  ;;  %s31_s14 = sadd.s32 1, %s2190_s17 }
  0x1c   : > { %p29_p12 = scmp.eq.s32.totalorder %s28_s13, 0  ;;  %p38_p13 = scmp.ne.s32.totalorder %s2190_s17, %s2186_s16 }
  0x1d   : > { %p39_p0 = scmp.eq.s32.totalorder %s2194_s18, 0  ;;  %p1913_p7 = scmp.lt.s32.totalorder %s2194_s18, 2 }
  0x1e   : > { %s2302_s20 = scalar_select %p29_p12, %s2190_s17, %s31_s14  }
  0x1f   : > { %p40_p3 = por %p39_p0, %p38_p13  ;;  %p2306_p5 = por %p136_p2, %p38_p13 }
  0x20   : > { %2796 = sst [smem:[#allocation16_spill]] %s2302_s20  ;;  %s2312_s24 = sand.u32 1, %s2190_s17  }
  0x21   : > { %s1603_s25 = sshll.u32 %s2312_s24, 7  ;;  %s1817_s27 = sshll.u32 %s2194_s18, 7 }
  0x22   : > { %s2798_s0 = sld [smem:[#allocation17_spill]]  ;;  %s194_s5 = scalar_lea.vmem [#allocation2], %s1603_s25 }
  0x23   : > { %s202_s8 = sshll.u32 %s194_s5, 4  ;;  %p2319_p2 = pnand %p1913_p7, %p40_p3  ;;  %s203_s8 = int_to_ptr.vmem [resolvable:$true] %s202_s8 }
  0x24   : > { %s212_s11 = sand.u32 1, %s2194_s18   ;;  %s191_s13 = scalar_lea.sflag [#allocation3], %s2312_s24 }
  0x25   : > { %p2060_p10 = pneg %p2319_p2 }
  0x28   : > { %s199_s30 = scalar_lea.hbm %s2798_s0, %s1817_s27  ;;  %s2063_s28 = scalar_lea.hbm %s2798_s0, 256 }
  0x29   : > { %s200_s9 = sshll.u32 %s199_s30, 4  ;;  %s201_s9 = int_to_ptr.hbm [resolvable:$true] %s200_s9 }
  0x2a   : > { %s2056_s14 = sshra.s32 %s201_s9, 4  ;;  %s2057_s14 = int_to_ptr.hbm [resolvable:$true] %s2056_s14 }
  0x2b   : > { %s2058_s6 = scalar_lea.hbm %s2057_s14, 128  ;;  %p2064_p0 = scmp.lt.s32.totalorder %s2057_s14, %s2798_s0 }
  0x2c   : > { %p2059_p9 = scmp.ne.s32.totalorder %s2057_s14, %s2058_s6  ;;  %p2065_p3 = scmp.lt.s32.totalorder %s2063_s28, %s2058_s6 }
  0x2e   : > { %p2061_p12 = pnand %p2060_p10, %p2059_p9  ;;  %p2066_p7 = por %p2065_p3, %p2064_p0 }
  0x30   : > { %p2062_p13 = pneg %p2061_p12 }
  0x32   : > { %p2067_p11 = pnand %p2066_p7, %p2062_p13 }
  0x34   : > { %2070 = shalt.err (!%p2067_p11)
}
  0x35   : > { %s2202_s5 = smov 256   ;;  %s2203_s7 = smov 16  }
  0x36   : > { %1903 = dma.hbm_to_vmem [thread:$0]  (!%p2319_p2), %s201_s9, 2048, %s203_s8, %s191_s13, %s2202_s5, %s2202_s5, %s2203_s7  }
  0x37   : > { %s1876_s2 = smul.u32 144, %s2312_s24  ;;  %s213_s28 = scalar_lea.sflag [#allocation6], %s212_s11 }
  0x38   : > { %s1877_s3 = smul.u32 144, %s2194_s18  ;;  %s2093_s8 = scalar_lea.hbm %s2782_s1, 288 }
  0x39   : > { %s216_s29 = scalar_lea.vmem [#allocation5], %s1876_s2 }
  0x3a   : > { %s221_s20 = scalar_lea.hbm %s2782_s1, %s1877_s3  ;;  %s224_s14 = sshll.u32 %s216_s29, 4  ;;  %s225_s14 = int_to_ptr.vmem [resolvable:$true] %s224_s14 }
  0x3b   : > { %s222_s6 = sshll.u32 %s221_s20, 4  ;;  %s223_s6 = int_to_ptr.hbm [resolvable:$true] %s222_s6 }
  0x3c   : > { %s2086_s30 = sshra.s32 %s223_s6, 4  ;;  %s2087_s30 = int_to_ptr.hbm [resolvable:$true] %s2086_s30 }
  0x3d   : > { %s2088_s0 = scalar_lea.hbm %s2087_s30, 144  ;;  %p2094_p13 = scmp.lt.s32.totalorder %s2087_s30, %s2782_s1 }
  0x3e   : > { %p2089_p11 = scmp.ne.s32.totalorder %s2087_s30, %s2088_s0  ;;  %p2095_p0 = scmp.lt.s32.totalorder %s2093_s8, %s2088_s0 }
  0x40   : > { %p2091_p9 = pnand %p2089_p11, %p2060_p10  ;;  %p2096_p3 = por %p2095_p0, %p2094_p13 }
  0x42   : > { %p2092_p12 = pneg %p2091_p9 }
  0x44   : > { %p2097_p7 = pnand %p2096_p3, %p2092_p12 }
  0x46   : > { %2100 = shalt.err (!%p2097_p7)
}
  0x47   : > { %s2800_s2 = smov 4   ;;  %s2801_s20 = smov 64  }
  0x48   : > { %1906 = dma.hbm_to_vmem [thread:$0]  (!%p2319_p2), %s223_s6, 2304, %s225_s14, %s213_s28, %s2801_s20, %s2801_s20, %s2800_s2  }
  0x49   : > { %236 = sbr.rel (%p2277_p8) target bundleno = 878 (0x36e), region = 36  ;;  %s2360_s11 = sand.u32 (!%p2277_p8), 1, %s2186_s16  }
  0x4a   : > { %s1608_s0 = sshll.u32 (!%p2277_p8), %s2360_s11, 7  ;;  %s239_s13 = scalar_lea.sflag (!%p2277_p8), [#allocation3], %s2360_s11 }
  0x4b   : > { %s2366_s5 = scalar_lea.vmem (!%p2277_p8), [#allocation2], %s1608_s0 }
  0x4e   : > { %2161 = dma.done.wait (%p2264_p4), %s239_s13, 2048  }
  0x4f   : > { %2163 = vsyncadd (%p2264_p4), %s239_s13, 4294965248  ;;  %s248_s26 = sand.u32 1, %s2255_s19   ;;  %s1878_s10 = smul.u32 144, %s2360_s11 }
  0x50   : > { %s249_s25 = scalar_lea.sflag [#allocation6], %s248_s26 }
  0x51   : > { %s2374_s27 = scalar_lea.vmem [#allocation5], %s1878_s10 }
  0x52   : > { %2165 = dma.done.wait (%p2264_p4), %s249_s25, 2304  }
  0x53   : > { %2167 = vsyncadd (%p2264_p4), %s249_s25, 4294964992 }
  0x54   : > { %2169 = dma.done.wait (%p45_p1), [#allocation6], 2496  }
  0x55   : > { %2171 = vsyncadd (%p45_p1), [#allocation6], 4294964800 }
  0x56   : > { %2173 = dma.done.wait (%p45_p1), [#allocation9], 1024  }
  0x57   : > { %2175 = vsyncadd (%p45_p1), [#allocation9], 4294966272  ;;  %v308_v0 = vld [vmem:[%s2366_s5 + $0x70] sm:$0xff]  ;;  %v309_v1 = vld [vmem:[%s2366_s5 + $0x78] sm:$0xff]  ;;  %vm382_vm0 = vcmask 7168   ;;  %vm391_vm1 = vcmask 523264  }
  0x58   : > { %v306_v2 = vld [vmem:[%s2366_s5 + $0x60] sm:$0xff]  ;;  %v331_v3 = vadd.f32 %v309_v1, %v308_v0  ;;  %v307_v4 = vld [vmem:[%s2366_s5 + $0x68] sm:$0xff]  ;;  %v304_v5 = vld [vmem:[%s2366_s5 + $0x50] sm:$0xff]  ;;  %v348_v9 = vmul.f32 %v308_v0, %v308_v0  ;;  %v349_v10 = vmul.f32 %v309_v1, %v309_v1  ;;  %vm936_vm2 = vcmask 1040384   ;;  %s2205_s21 = smov 1   ;;  %s2691_s29 = scalar_lea.vmem [#allocation10], %s1608_s0 }
  0x59   : > { %v305_v6 = vld [vmem:[%s2366_s5 + $0x58] sm:$0xff]  ;;  %v328_v7 = vadd.f32 %v307_v4, %v306_v2  ;;  %v346_v11 = vmul.f32 %v306_v2, %v306_v2  ;;  %v347_v12 = vmul.f32 %v307_v4, %v307_v4  ;;  %v344_v13 = vmul.f32 %v304_v5, %v304_v5  ;;  %v302_v18 = vld [vmem:[%s2366_s5 + $0x40] sm:$0xff]  ;;  %v303_v19 = vld [vmem:[%s2366_s5 + $0x48] sm:$0xff]  ;;  %s1854_s14 = sshll.u32 %s2255_s19, 7  ;;  %s1480_s7 = sshll.u32 %s2691_s29, 4  ;;  %s1481_s7 = int_to_ptr.vmem [resolvable:$true] %s1480_s7 }
  0x5a   : > { %v325_v8 = vadd.f32 %v305_v6, %v304_v5  ;;  %332 = vadd.xlane.f32.xlu0 %v331_v3  ;;  %v345_v14 = vmul.f32 %v305_v6, %v305_v6  ;;  %v371_v15 = vadd.f32 %v349_v10, %v348_v9  ;;  %v342_v20 = vmul.f32 %v302_v18, %v302_v18  ;;  %v2397_v22 = vld [vmem:[%s2366_s5 + $0x30] sm:$0xff]  ;;  %v2400_v23 = vld [vmem:[%s2366_s5 + $0x38] sm:$0xff]  ;;  %v298_v29 = vld [vmem:[%s2366_s5 + $0x20] sm:$0xff]  ;;  %s1479_s30 = scalar_lea.hbm %s2785_s4, %s1854_s14  ;;  %s1468_s19 = scalar_lea.sflag [#allocation4], %s2360_s11 }
  0x5b   : > { %329 = vadd.xlane.f32.xlu1 %v328_v7  ;;  %v368_v16 = vadd.f32 %v347_v12, %v346_v11  ;;  %v343_v21 = vmul.f32 %v303_v19, %v303_v19  ;;  %v322_v24 = vadd.f32 %v303_v19, %v302_v18  ;;  %v319_v26 = vadd.f32 %v2400_v23, %v2397_v22  ;;  %v299_v30 = vld [vmem:[%s2366_s5 + $0x28] sm:$0xff]  ;;  %v2411_v36 = vld [vmem:[%s2366_s5 + $0x10] sm:$0xff]  ;;  %v2414_v37 = vld [vmem:[%s2366_s5 + $0x18] sm:$0xff]  ;;  %s1482_s24 = sshll.u32 %s1479_s30, 4  ;;  %s2136_s20 = scalar_lea.hbm %s2785_s4, 256  ;;  %s1483_s24 = int_to_ptr.hbm [resolvable:$true] %s1482_s24 }
  0x5c   : > { %326 = vadd.xlane.f32.xlu2 %v325_v8  ;;  %v365_v17 = vadd.f32 %v345_v14, %v344_v13  ;;  %v340_v27 = vmul.f32 %v2397_v22, %v2397_v22  ;;  %v341_v28 = vmul.f32 %v2400_v23, %v2400_v23  ;;  %v338_v31 = vmul.f32 %v298_v29, %v298_v29  ;;  %v294_v41 = vld [vmem:[%s2366_s5] sm:$0xff]  ;;  %v295_v42 = vld [vmem:[%s2366_s5 + $0x8] sm:$0xff]  ;;  %s2130_s8 = sshra.s32 %s1483_s24, 4  ;;  %s2131_s8 = int_to_ptr.hbm [resolvable:$true] %s2130_s8 }
  0x5d   : > { %v362_v25 = vadd.f32 %v343_v21, %v342_v20  ;;  %v339_v32 = vmul.f32 %v299_v30, %v299_v30  ;;  %v316_v34 = vadd.f32 %v299_v30, %v298_v29  ;;  %v336_v38 = vmul.f32 %v2411_v36, %v2411_v36  ;;  %v374_v7 = vld [vmem:[#allocation8] sm:$0xff]  ;;  %v767_v9 = vld [vmem:[#allocation7 + $0x64] sm:$0x1]  ;;  %v376_v18 = vld [vmem:[#allocation8 + $0x10] sm:$0xff]  ;;  %s2132_s9 = scalar_lea.hbm %s2131_s8, 128  ;;  %p2137_p2 = scmp.lt.s32.totalorder %s2131_s8, %s2785_s4 }
  0x5e   : > { %v359_v33 = vadd.f32 %v341_v28, %v340_v27  ;;  %v337_v39 = vmul.f32 %v2414_v37, %v2414_v37  ;;  %v313_v40 = vadd.f32 %v2414_v37, %v2411_v36  ;;  %v310_v44 = vadd.f32 %v295_v42, %v294_v41  ;;  %v1845_v19 = vld [vmem:[#allocation7 + $0x4c] sm:$0xff]  ;;  %v1844_v20 = vld [vmem:[#allocation7 + $0x44] sm:$0xff]  ;;  %v377_v21 = vld [vmem:[#allocation8 + $0x18] sm:$0xff]  ;;  %p2133_p1 = scmp.ne.s32.totalorder %s2131_s8, %s2132_s9  ;;  %p2138_p10 = scmp.lt.s32.totalorder %s2136_s20, %s2132_s9 }
  0x5f   : > { %v356_v35 = vadd.f32 %v339_v32, %v338_v31  ;;  %v334_v45 = vmul.f32 %v294_v41, %v294_v41  ;;  %v335_v46 = vmul.f32 %v295_v42, %v295_v42  ;;  %v873_v10 = vunpack.c.l.b16 %v767_v9  ;;  %v379_v27 = vld [vmem:[#allocation8 + $0x28] sm:$0xff]  ;;  %v380_v28 = vld [vmem:[#allocation8 + $0x30] sm:$0xff]  ;;  %v1183_v31 = vld [vmem:[#allocation7 + $0x98] sm:$0x1] }
  0x60   : > { %v353_v43 = vadd.f32 %v337_v39, %v336_v38  ;;  %v2204_v11 = vmov 0   ;;  %v753_v29 = vld [vmem:[#allocation7 + $0x30] sm:$0x1]  ;;  %v381_v38 = vld [vmem:[#allocation8 + $0x38] sm:$0xff]  ;;  %v1840_v42 = vld [vmem:[#allocation7 + $0x20] sm:$0xff]  ;;  %vm887_vm3 = vcmask 793600   ;;  %p2134_p4 = pnand %p2133_p1, %p2306_p5  ;;  %p2139_p11 = por %p2138_p10, %p2137_p2 }
  0x61   : > { %v350_v47 = vadd.f32 %v335_v46, %v334_v45  ;;  %v938_v12 = vsel %vm936_vm2, 65535, %v2204_v11  ;;  %1962 = vset.pattern.permute.xlu0 %v2204_v11  ;;  %1963 = vset.pattern.permute.xlu2 %v2204_v11  ;;  %v880_v13 = vpack.c.b16 %v873_v10, %v873_v10  ;;  %v1061_v30 = vunpack.c.l.b16 %v753_v29  ;;  %v1853_v41 = vld [vmem:[#allocation7 + $0x90] sm:$0xff]  ;;  %v1839_v45 = vld [vmem:[#allocation7 + $0x18] sm:$0xff]  ;;  %v1851_v46 = vld [vmem:[#allocation7 + $0x80] sm:$0xff] }
  0x62   : > { %372 = vadd.xlane.f32.xlu0 %v371_v15  ;;  %1964 = vset.pattern.permute.xlu1 %v2204_v11  ;;  %v375_v15 = vld [vmem:[#allocation8 + $0x8] sm:$0xff]  ;;  %p2135_p8 = pneg %p2134_p4 }
  0x63   : > { %369 = vadd.xlane.f32.xlu1 %v368_v16  ;;  %v940_v14 = vand.u32 %v938_v12, %v880_v13  ;;  %v1847_v16 = vld [vmem:[#allocation7 + $0x5c] sm:$0xff]  ;;  %v1068_v32 = vpack.c.b16 %v1061_v30, %v1061_v30 }
  0x64   : > { %366 = vadd.xlane.f32.xlu2 %v365_v17  ;;  %v1846_v17 = vld [vmem:[#allocation7 + $0x54] sm:$0xff]  ;;  %p2140_p9 = pnand %p2139_p11, %p2135_p8 }
  0x65   : > { %1855 = vmatpush.bf16.msra.mxu1 %v940_v14  ;;  %v1829_v13 = vld [vmem:[%s2374_s27 + $0x58] sm:$0xff] }
  0x69   : > { %1856 = vmatpush.bf16.msra.mxu1 %v1847_v16 }
  0x6a   : > { %323 = vadd.xlane.f32.xlu0 %v322_v24  ;;  %v1843_v24 = vld [vmem:[#allocation7 + $0x3c] sm:$0xff] }
  0x6b   : > { %363 = vadd.xlane.f32.xlu1 %v362_v25  ;;  %v1842_v25 = vld [vmem:[#allocation7 + $0x34] sm:$0xff] }
  0x6c   : > { %320 = vadd.xlane.f32.xlu2 %v319_v26  ;;  %v378_v26 = vld [vmem:[#allocation8 + $0x20] sm:$0xff] }
  0x6d   : > { %1857 = vmatpush.bf16.msra.mxu1 %v1846_v17 }
  0x71   : > { %1858 = vmatpush.bf16.msra.mxu1 %v1845_v19 }
  0x72   : > { %360 = vadd.xlane.f32.xlu0 %v359_v33  ;;  %v1214_v33 = vunpack.c.l.b16 %v1183_v31  ;;  %v1832_v31 = vld [vmem:[%s2374_s27 + $0x70] sm:$0xff] }
  0x73   : > { %317 = vadd.xlane.f32.xlu1 %v316_v34  ;;  %v1079_v34 = vand.u32 %v1068_v32, %v938_v12 }
  0x74   : > { %357 = vadd.xlane.f32.xlu2 %v356_v35  ;;  %v1221_v35 = vpack.c.b16 %v1214_v33, %v1214_v33 }
  0x75   : > { %1859 = vmatpush.bf16.msra.mxu1 %v1844_v20  ;;  %1862 = vmatpush.bf16.msra.mxu2 %v1079_v34 }
  0x76   : > { %v1232_v39 = vand.u32 %v1221_v35, %v938_v12 }
  0x78   : > { %1869 = vmatpush.bf16.msra.mxu3 %v1232_v39 }
  0x79   : > { %1860 = vmatpush.bf16.msra.mxu1 %v1843_v24 }
  0x7a   : > { %314 = vadd.xlane.f32.xlu0 %v313_v40  ;;  %v1841_v40 = vld [vmem:[#allocation7 + $0x28] sm:$0xff] }
  0x7b   : > { %354 = vadd.xlane.f32.xlu1 %v353_v43  ;;  %1863 = vmatpush.bf16.msra.mxu2 %v1841_v40  ;;  %v1852_v43 = vld [vmem:[#allocation7 + $0x88] sm:$0xff] }
  0x7c   : > { %311 = vadd.xlane.f32.xlu2 %v310_v44  ;;  %1870 = vmatpush.bf16.msra.mxu3 %v1853_v41  ;;  %v1819_v44 = vld [vmem:[%s2374_s27 + $0x8] sm:$0xff] }
  0x7d   : > { %1861 = vmatpush.bf16.msra.mxu1 %v1842_v25 }
  0x7f   : > { %1864 = vmatpush.bf16.msra.mxu2 %v1840_v42 }
  0x80   : > { %1871 = vmatpush.bf16.msra.mxu3 %v1852_v43 }
  0x82   : > { %351 = vadd.xlane.f32.xlu0 %v350_v47  ;;  %v1838_v47 = vld [vmem:[#allocation7 + $0x10] sm:$0xff] }
  0x83   : > { %1865 = vmatpush.bf16.msra.mxu2 %v1839_v45 }
  0x84   : > { %1872 = vmatpush.bf16.msra.mxu3 %v1851_v46 }
  0x87   : > { %1866 = vmatpush.bf16.msra.mxu2 %v1838_v47 }
  0xcd   : > { %v333_v48 = vpop.xlane.xlu0 %332 }
  0xce   : > { %v330_v49 = vpop.xlane.xlu1 %329 }
  0xcf   : > { %v327_v50 = vpop.xlane.xlu2 %326 }
  0xd5   : > { %v373_v51 = vpop.xlane.xlu0 %372 }
  0xd6   : > { %v370_v52 = vpop.xlane.xlu1 %369  ;;  %v390_v54 = vsel %vm382_vm0, %v333_v48, %v373_v51  ;;  %v1850_v48 = vld [vmem:[#allocation7 + $0x78] sm:$0xff]  ;;  %v1836_v51 = vld [vmem:[#allocation7] sm:$0xff] }
  0xd7   : > { %v367_v53 = vpop.xlane.xlu2 %366  ;;  %424 = vmatpush.msra.mxu0 %v390_v54  ;;  %v389_v55 = vsel %vm382_vm0, %v330_v49, %v370_v52  ;;  %v1837_v49 = vld [vmem:[#allocation7 + $0x8] sm:$0xff]  ;;  %1873 = vmatpush.bf16.msra.mxu3 %v1850_v48 }
  0xd8   : > { %v388_v56 = vsel %vm382_vm0, %v327_v50, %v367_v53  ;;  %v1849_v50 = vld [vmem:[#allocation7 + $0x70] sm:$0xff]  ;;  %1867 = vmatpush.bf16.msra.mxu2 %v1837_v49  ;;  %v1848_v52 = vld [vmem:[#allocation7 + $0x68] sm:$0xff] }
  0xd9   : > { %425 = vmatpush.msra.mxu0 %v389_v55  ;;  %v1820_v53 = vld [vmem:[%s2374_s27 + $0x10] sm:$0xff]  ;;  %v2444_v54 = vld [vmem:[%s2374_s27 + $0x18] sm:$0xff]  ;;  %v1823_v55 = vld [vmem:[%s2374_s27 + $0x28] sm:$0xff] }
  0xdb   : > { %426 = vmatpush.msra.mxu0 %v388_v56  ;;  %1874 = vmatpush.bf16.msra.mxu3 %v1849_v50  ;;  %v2451_v56 = vld [vmem:[%s2374_s27 + $0x20] sm:$0xff] }
  0xdc   : > { %1868 = vmatpush.bf16.msra.mxu2 %v1836_v51  ;;  %1711 = vmatmul.msk.bf16.vlgmr.msra.gmra.mxu1 %vm887_vm3, %v2451_v56 }
  0xdd   : > { %v324_v57 = vpop.xlane.xlu0 %323 }
  0xde   : > { %v364_v58 = vpop.xlane.xlu1 %363 }
  0xdf   : > { %v321_v59 = vpop.xlane.xlu2 %320  ;;  %v387_v60 = vsel %vm382_vm0, %v324_v57, %v364_v58  ;;  %1875 = vmatpush.bf16.msra.mxu3 %v1848_v52  ;;  %1755 = vmatmul.msk.bf16.vlgmr.msra.gmra.mxu2 %vm887_vm3, %v2444_v54  ;;  %v1824_v57 = vld [vmem:[%s2374_s27 + $0x30] sm:$0xff]  ;;  %v1818_v58 = vld [vmem:[%s2374_s27] sm:$0xff] }
  0xe0   : > { %427 = vmatpush.msra.mxu0 %v387_v60 }
  0xe2   : > { %1799 = vmatmul.msk.bf16.vlgmr.msra.gmra.mxu3 %vm887_vm3, %v1823_v55 }
  0xe5   : > { %v361_v61 = vpop.xlane.xlu0 %360 }
  0xe6   : > { %v318_v62 = vpop.xlane.xlu1 %317  ;;  %v386_v63 = vsel %vm382_vm0, %v321_v59, %v361_v61  ;;  %v1825_v59 = vld [vmem:[%s2374_s27 + $0x38] sm:$0xff] }
  0xe7   : > { %v358_v0 = vpop.xlane.xlu2 %357  ;;  %428 = vmatpush.msra.mxu0 %v386_v63 }
  0xe8   : > { %v385_v1 = vsel %vm382_vm0, %v318_v62, %v358_v0  ;;  %v1826_v62 = vld [vmem:[%s2374_s27 + $0x40] sm:$0xff] }
  0xe9   : > { %429 = vmatpush.msra.mxu0 %v385_v1 }
  0xec   : > { %1712 = vmatmul.msk.bf16.gmra.mxu1 %vm887_vm3, %v1823_v55 }
  0xed   : > { %v315_v2 = vpop.xlane.xlu0 %314 }
  0xee   : > { %v355_v3 = vpop.xlane.xlu1 %354 }
  0xef   : > { %v384_v4 = vsel %vm382_vm0, %v315_v2, %v355_v3  ;;  %v312_v5 = vpop.xlane.xlu2 %311  ;;  %1756 = vmatmul.msk.bf16.gmra.mxu2 %vm887_vm3, %v2451_v56  ;;  %v1827_v3 = vld [vmem:[%s2374_s27 + $0x48] sm:$0xff] }
  0xf0   : > { %430 = vmatpush.msra.mxu0 %v384_v4 }
  0xf2   : > { %1800 = vmatmul.msk.bf16.gmra.mxu3 %vm887_vm3, %v1824_v57 }
  0xf5   : > { %v352_v6 = vpop.xlane.xlu0 %351 }
  0xf6   : > { %v383_v8 = vsel %vm382_vm0, %v312_v5, %v352_v6 }
  0xf7   : > { %431 = vmatpush.msra.mxu0 %v383_v8  ;;  %v1828_v8 = vld [vmem:[%s2374_s27 + $0x50] sm:$0xff] }
  0xf8   : > { %1612 = vmatmul.msk.f32.vlgmr.msra.gmra.mxu0 %vm391_vm1, %v374_v7 }
  0xf9   : > { %943 = vmatpush.bf16.msrb.mxu0 %v940_v14 }
  0xfc   : > { %1713 = vmatmul.msk.bf16.gmra.mxu1 %vm887_vm3, %v1824_v57 }
  0xfd   : > { %944 = vmatpush.bf16.msrb.mxu0 %v1847_v16  ;;  %v1830_v16 = vld [vmem:[%s2374_s27 + $0x60] sm:$0xff] }
  0xff   : > { %1757 = vmatmul.msk.bf16.gmra.mxu2 %vm887_vm3, %v1823_v55 }
 0x100   : > { %1613 = vmatmul.msk.f32.gmra.mxu0 %vm391_vm1, %v375_v15 }
 0x101   : > { %945 = vmatpush.bf16.msrb.mxu0 %v1846_v17 }
 0x102   : > { %1801 = vmatmul.msk.bf16.gmra.mxu3 %vm887_vm3, %v1825_v59 }
 0x105   : > { %946 = vmatpush.bf16.msrb.mxu0 %v1845_v19 }
 0x108   : > { %1614 = vmatmul.msk.f32.gmra.mxu0 %vm391_vm1, %v376_v18  ;;  %v1831_v18 = vld [vmem:[%s2374_s27 + $0x68] sm:$0xff] }
 0x109   : > { %947 = vmatpush.bf16.msrb.mxu0 %v1844_v20 }
 0x10c   : > { %1714 = vmatmul.msk.bf16.gmra.mxu1 %vm887_vm3, %v1825_v59 }
 0x10d   : > { %948 = vmatpush.bf16.msrb.mxu0 %v1843_v24 }
 0x10f   : > { %1758 = vmatmul.msk.bf16.gmra.mxu2 %vm887_vm3, %v1824_v57 }
 0x110   : > { %1615 = vmatmul.msk.f32.gmra.mxu0 %vm391_vm1, %v377_v21 }
 0x111   : > { %949 = vmatpush.bf16.msrb.mxu0 %v1842_v25 }
 0x112   : > { %1802 = vmatmul.msk.bf16.gmra.mxu3 %vm887_vm3, %v1826_v62 }
 0x115   : > { %1082 = vmatpush.bf16.msra.mxu0 %v1079_v34 }
 0x118   : > { %1616 = vmatmul.msk.f32.gmra.mxu0 %vm391_vm1, %v378_v26  ;;  %v2206_v26 = vmov 1  }
 0x119   : > { %1083 = vmatpush.bf16.msra.mxu0 %v1841_v40 }
 0x11c   : > { %1715 = vmatmul.msk.bf16.gmra.mxu1 %vm887_vm3, %v1826_v62 }
 0x11d   : > { %1084 = vmatpush.bf16.msra.mxu0 %v1840_v42 }
 0x11f   : > { %1759 = vmatmul.msk.bf16.gmra.mxu2 %vm887_vm3, %v1825_v59 }
 0x120   : > { %1617 = vmatmul.msk.f32.gmra.mxu0 %vm391_vm1, %v379_v27 }
 0x121   : > { %1085 = vmatpush.bf16.msra.mxu0 %v1839_v45 }
 0x122   : > { %1803 = vmatmul.msk.bf16.gmra.mxu3 %vm887_vm3, %v1827_v3 }
 0x125   : > { %1086 = vmatpush.bf16.msra.mxu0 %v1838_v47 }
 0x128   : > { %1618 = vmatmul.msk.f32.gmra.mxu0 %vm391_vm1, %v380_v28 }
 0x129   : > { %1087 = vmatpush.bf16.msra.mxu0 %v1837_v49 }
 0x12c   : > { %1716 = vmatmul.msk.bf16.gmra.mxu1 %vm887_vm3, %v1827_v3 }
 0x12d   : > { %1088 = vmatpush.bf16.msra.mxu0 %v1836_v51  ;;  %v2566_v51 = vld [vmem:[%s2374_s27 + $0x78] sm:$0xff] }
 0x12f   : > { %1760 = vmatmul.msk.bf16.gmra.mxu2 %vm887_vm3, %v1826_v62 }
 0x130   : > { %1619 = vmatmul.msk.f32.gmra.mxu0 %vm391_vm1, %v381_v38 }
 0x132   : > { %1804 = vmatmul.msk.bf16.gmra.mxu3 %vm887_vm3, %v1828_v8 }
 0x138   : > { %1708 = vmatmul.msk.bf16.vlgmr.msrb.gmra.mxu0 %vm887_vm3, %v1819_v44 }
 0x139   : > { %1235 = vmatpush.bf16.msrb.mxu0 %v1232_v39 }
 0x13c   : > { %1717 = vmatmul.msk.bf16.gmra.mxu1 %vm887_vm3, %v1828_v8 }
 0x13d   : > { %1236 = vmatpush.bf16.msrb.mxu0 %v1853_v41 }
 0x13f   : > { %1761 = vmatmul.msk.bf16.gmra.mxu2 %vm887_vm3, %v1827_v3 }
 0x141   : > { %1237 = vmatpush.bf16.msrb.mxu0 %v1852_v43 }
 0x142   : > { %1805 = vmatmul.msk.bf16.gmra.mxu3 %vm887_vm3, %v1829_v13 }
 0x145   : > { %1238 = vmatpush.bf16.msrb.mxu0 %v1851_v46 }
 0x148   : > { %1709 = vmatmul.msk.bf16.gmra.mxu0 %vm887_vm3, %v1820_v53 }
 0x149   : > { %1239 = vmatpush.bf16.msrb.mxu0 %v1850_v48 }
 0x14c   : > { %1718 = vmatmul.msk.bf16.gmra.mxu1 %vm887_vm3, %v1829_v13 }
 0x14d   : > { %1240 = vmatpush.bf16.msrb.mxu0 %v1849_v50 }
 0x14f   : > { %1762 = vmatmul.msk.bf16.gmra.mxu2 %vm887_vm3, %v1828_v8 }
 0x151   : > { %1241 = vmatpush.bf16.msrb.mxu0 %v1848_v52 }
 0x152   : > { %1806 = vmatmul.msk.bf16.gmra.mxu3 %vm887_vm3, %v1830_v16 }
 0x158   : > { %1710 = vmatmul.msk.bf16.gmra.mxu0 %vm887_vm3, %v2444_v54 }
 0x159   : > { %v966_v19 = vpop.f32.mrf.mxu1 }
 0x15c   : > { %1719 = vmatmul.msk.bf16.gmra.mxu1 %vm887_vm3, %v1830_v16 }
 0x15f   : > { %1763 = vmatmul.msk.bf16.gmra.mxu2 %vm887_vm3, %v1829_v13 }
 0x161   : > { %v968_v27 = vpop.f32.mrf.mxu1 }
 0x162   : > { %1807 = vmatmul.msk.bf16.gmra.mxu3 %vm887_vm3, %v1831_v18  ;;  %v1105_v20 = vpop.f32.mrf.mxu2 }
 0x163   : > { %v1106_v21 = vadd.f32 %v1105_v20, %v966_v19 }
 0x165   : > { %v1258_v24 = vpop.f32.mrf.mxu3 }
 0x166   : > { %v2559_v34 = vadd.f32 %v1258_v24, %v1106_v21  ;;  %v1834_v21 = vld [vmem:[%s2374_s27 + $0x80] sm:$0xff] }
 0x168   : > { %1752 = vmatmul.msk.bf16.vlgmr.msra.gmra.mxu0 %vm887_vm3, %v1818_v58 }
 0x169   : > { %v971_v38 = vpop.f32.mrf.mxu1 }
 0x16a   : > { %v1107_v28 = vpop.f32.mrf.mxu2 }
 0x16b   : > { %v1108_v35 = vadd.f32 %v1107_v28, %v968_v27 }
 0x16c   : > { %1720 = vmatmul.msk.bf16.gmra.mxu1 %vm887_vm3, %v1831_v18 }
 0x16d   : > { %v1260_v29 = vpop.f32.mrf.mxu3 }
 0x16e   : > { %v2561_v42 = vadd.f32 %v1260_v29, %v1108_v35 }
 0x16f   : > { %1764 = vmatmul.msk.bf16.gmra.mxu2 %vm887_vm3, %v1830_v16 }
 0x171   : > { %v973_v45 = vpop.f32.mrf.mxu1 }
 0x172   : > { %1808 = vmatmul.msk.bf16.gmra.mxu3 %vm887_vm3, %v1832_v31  ;;  %v1110_v39 = vpop.f32.mrf.mxu2 }
 0x173   : > { %v1111_v40 = vadd.f32 %v1110_v39, %v971_v38 }
 0x175   : > { %v2469_v60 = vpop.f32.mrf.mxu0  ;;  %v1263_v43 = vpop.f32.mrf.mxu3 }
 0x176   : > { %v457_v61 = vmul.f32 %v2469_v60, %v2469_v60  ;;  %v2569_v55 = vadd.f32 %v1263_v43, %v1111_v40 }
 0x178   : > { %1753 = vmatmul.msk.bf16.gmra.mxu0 %vm887_vm3, %v1819_v44  ;;  %473 = vrot.lane.b32.xlu1 %v457_v61, %s2205_s21 }
 0x179   : > { %v976_v59 = vpop.f32.mrf.mxu1 }
 0x17a   : > { %v1112_v46 = vpop.f32.mrf.mxu2 }
 0x17c   : > { %1721 = vmatmul.msk.bf16.gmra.mxu1 %vm887_vm3, %v1832_v31 }
 0x17d   : > { %v2479_v63 = vpop.f32.mrf.mxu0  ;;  %v1265_v48 = vpop.f32.mrf.mxu3 }
 0x17e   : > { %v458_v0 = vmul.f32 %v2479_v63, %v2479_v63 }
 0x17f   : > { %1765 = vmatmul.msk.bf16.gmra.mxu2 %vm887_vm3, %v1831_v18 }
 0x180   : > { %475 = vrot.lane.b32.xlu2 %v458_v0, %s2205_s21 }
 0x181   : > { %v978_v8 = vpop.f32.mrf.mxu1 }
 0x182   : > { %1809 = vmatmul.msk.bf16.gmra.mxu3 %vm887_vm3, %v2566_v51  ;;  %v1115_v61 = vpop.f32.mrf.mxu2 }
 0x185   : > { %v2484_v1 = vpop.f32.mrf.mxu0  ;;  %v1268_v3 = vpop.f32.mrf.mxu3 }
 0x186   : > { %v459_v2 = vmul.f32 %v2484_v1, %v2484_v1 }
 0x188   : > { %1754 = vmatmul.msk.bf16.gmra.mxu0 %vm887_vm3, %v1820_v53  ;;  %477 = vrot.lane.b32.xlu0 %v459_v2, %s2205_s21 }
 0x189   : > { %v981_v35 = vpop.f32.mrf.mxu1 }
 0x18c   : > { %1722 = vmatmul.msk.bf16.gmra.mxu1 %vm887_vm3, %v2566_v51 }
 0x18d   : > { %v2494_v4 = vpop.f32.mrf.mxu0  ;;  %v1270_v13 = vpop.f32.mrf.mxu3 }
 0x18e   : > { %v460_v5 = vmul.f32 %v2494_v4, %v2494_v4 }
 0x18f   : > { %1766 = vmatmul.msk.bf16.gmra.mxu2 %vm887_vm3, %v1832_v31 }
 0x190   : > { %479 = vrot.lane.b32.xlu2 %v460_v5, %s2205_s21 }
 0x192   : > { %1810 = vmatmul.msk.bf16.gmra.mxu3 %vm887_vm3, %v1834_v21 }
 0x195   : > { %v2499_v6 = vpop.f32.mrf.mxu0  ;;  %v1273_v31 = vpop.f32.mrf.mxu3 }
 0x196   : > { %v461_v7 = vmul.f32 %v2499_v6, %v2499_v6 }
 0x198   : > { %1796 = vmatmul.msk.bf16.vlgmr.msrb.gmra.mxu0 %vm887_vm3, %v1820_v53  ;;  %481 = vrot.lane.b32.xlu1 %v461_v7, %s2205_s21 }
 0x19c   : > { %1723 = vmatmul.msk.bf16.gmra.mxu1 %vm887_vm3, %v1834_v21 }
 0x19d   : > { %v2509_v9 = vpop.f32.mrf.mxu0 }
 0x19e   : > { %v462_v10 = vmul.f32 %v2509_v9, %v2509_v9 }
 0x19f   : > { %1767 = vmatmul.msk.bf16.gmra.mxu2 %vm887_vm3, %v2566_v51 }
 0x1a0   : > { %483 = vrot.lane.b32.xlu0 %v462_v10, %s2205_s21  ;;  %v1117_v10 = vpop.f32.mrf.mxu2 }
 0x1a1   : > { %v1118_v29 = vadd.f32 %v1117_v10, %v978_v8 }
 0x1a5   : > { %v2514_v11 = vpop.f32.mrf.mxu0 }
 0x1a6   : > { %v463_v12 = vmul.f32 %v2514_v11, %v2514_v11 }
 0x1a8   : > { %1797 = vmatmul.msk.bf16.gmra.mxu0 %vm887_vm3, %v2444_v54  ;;  %595 = vperm.xlu0 %1962, %v2469_v60   ;;  %v1120_v39 = vpop.f32.mrf.mxu2 }
 0x1a9   : > { %485 = vrot.lane.b32.xlu2 %v463_v12, %s2205_s21 }
 0x1ad   : > { %v2526_v14 = vpop.f32.mrf.mxu0 }
 0x1ae   : > { %v464_v15 = vmul.f32 %v2526_v14, %v2526_v14 }
 0x1b0   : > { %620 = vperm.xlu0 %1962, %v2509_v9   ;;  %487 = vrot.lane.b32.xlu1 %v464_v15, %s2205_s21 }
 0x1b1   : > { %600 = vperm.xlu2 %1963, %v2479_v63  }
 0x1b5   : > { %v2543_v17 = vpop.f32.mrf.mxu0 }
 0x1b8   : > { %1798 = vmatmul.msk.bf16.gmra.mxu0 %vm887_vm3, %v2451_v56  ;;  %605 = vperm.xlu1 %1964, %v2484_v1   ;;  %v1113_v56 = vadd.f32 %v1112_v46, %v973_v45 }
 0x1b9   : > { %610 = vperm.xlu2 %1963, %v2494_v4   ;;  %1965 = vset.pattern.permute.xlu0 %v2206_v26 }
 0x1bd   : > { %v2550_v25 = vpop.f32.mrf.mxu0 }
 0x1c0   : > { %615 = vperm.xlu1 %1964, %v2499_v6  }
 0x1c1   : > { %625 = vperm.xlu2 %1963, %v2514_v11  }
 0x1c5   : > { %v2552_v30 = vpop.f32.mrf.mxu0 }
 0x1c8   : > { %630 = vperm.xlu1 %1964, %v2526_v14  }
 0x1c9   : > { %1966 = vset.pattern.permute.xlu2 %v2206_v26 }
 0x1cd   : > { %v2563_v44 = vpop.f32.mrf.mxu0 }
 0x1d0   : > { %1967 = vset.pattern.permute.xlu1 %v2206_v26 }
 0x1d5   : > { %v2576_v62 = vpop.f32.mrf.mxu0 }
 0x1da   : > { %v476_v32 = vpop.permute.xlu2 %475 }
 0x1db   : > { %v498_v33 = vsub.f32 %v2479_v63, %v476_v32 }
 0x1dd   : > { %v506_v41 = vadd.f32 1e-05, %v498_v33  ;;  %v2580_v16 = vpop.f32.mrf.mxu0 }
 0x1df   : > { %1968 = vrsqrt.f32 %v506_v41  ;;  %vm529_vm5 = vweird.f32 %v506_v41 }
 0x1e5   : > { %v1969_v47 = vpop.eup %1968  ;;  %v2590_v46 = vpop.f32.mrf.mxu0 }
 0x1e6   : > { %v524_v49 = vmul.f32 %v1969_v47, %v506_v41  ;;  %vm530_vm4 = vweird.f32 %v1969_v47 }
 0x1e7   : > { %vm531_vm6 = vmor %vm529_vm5, %vm530_vm4 }
 0x1e8   : > { %v525_v50 = vmul.f32 %v1969_v47, %v524_v49  ;;  %v1121_v49 = vadd.f32 %v1120_v39, %v981_v35 }
 0x1ea   : > { %v526_v52 = vmul.f32 0.5, %v525_v50  ;;  %v474_v53 = vpop.permute.xlu1 %473  ;;  %v480_v54 = vpop.permute.xlu2 %479 }
 0x1eb   : > { %v497_v57 = vsub.f32 %v2469_v60, %v474_v53  ;;  %v500_v58 = vsub.f32 %v2494_v4, %v480_v54  ;;  %v2578_v60 = vadd.f32 %v1265_v48, %v1113_v56  ;;  %v1116_v4 = vadd.f32 %v1115_v61, %v976_v59  ;;  %v1122_v56 = vpop.f32.mrf.mxu2  ;;  %v1275_v59 = vpop.f32.mrf.mxu3 }
 0x1ec   : > { %v527_v63 = vsub.f32 1.5, %v526_v52  ;;  %v2592_v48 = vadd.f32 %v1270_v13, %v1118_v29  ;;  %v983_v52 = vpop.f32.mrf.mxu1  ;;  %v2595_v54 = vadd.f32 %v1273_v31, %v1121_v49 }
 0x1ed   : > { %v505_v0 = vadd.f32 1e-05, %v497_v57  ;;  %v508_v2 = vadd.f32 1e-05, %v500_v58  ;;  %v2584_v28 = vadd.f32 %v1268_v3, %v1116_v4  ;;  %v1123_v58 = vadd.f32 %v1122_v56, %v983_v52  ;;  %v2600_v3 = vpop.f32.mrf.mxu0 }
 0x1ee   : > { %v528_v5 = vmul.f32 %v1969_v47, %v527_v63 }
 0x1ef   : > { %1970 = vrsqrt.f32 %v505_v0  ;;  %vm519_vm9 = vweird.f32 %v505_v0  ;;  %vm549_vm11 = vweird.f32 %v508_v2 }
 0x1f0   : > { %1972 = vrsqrt.f32 %v508_v2  ;;  %v532_v7 = vsel %vm531_vm6, %v1969_v47, %v528_v5 }
 0x1f1   : > { %656 = vperm.xlu2 %1966, %v532_v7  }
 0x1f3   : > { %v1125_v10 = vpop.f32.mrf.mxu2  ;;  %v1278_v13 = vpop.f32.mrf.mxu3 }
 0x1f4   : > { %v986_v4 = vpop.f32.mrf.mxu1 }
 0x1f5   : > { %v1971_v12 = vpop.eup %1970  ;;  %v1126_v21 = vadd.f32 %v1125_v10, %v986_v4 }
 0x1f6   : > { %v1973_v15 = vpop.eup %1972  ;;  %v514_v18 = vmul.f32 %v1971_v12, %v505_v0  ;;  %vm520_vm7 = vweird.f32 %v1971_v12 }
 0x1f7   : > { %v544_v19 = vmul.f32 %v1973_v15, %v508_v2  ;;  %vm550_vm8 = vweird.f32 %v1973_v15  ;;  %vm521_vm10 = vmor %vm519_vm9, %vm520_vm7  ;;  %v1835_v2 = vld [vmem:[%s2374_s27 + $0x88] sm:$0xff] }
 0x1f8   : > { %v515_v20 = vmul.f32 %v1971_v12, %v514_v18  ;;  %vm551_vm12 = vmor %vm549_vm11, %vm550_vm8  ;;  %1811 = vmatmul.msk.bf16.gmra.mxu3 %vm887_vm3, %v1835_v2 }
 0x1f9   : > { %v545_v24 = vmul.f32 %v1973_v15, %v544_v19 }
 0x1fa   : > { %v516_v26 = vmul.f32 0.5, %v515_v20  ;;  %v478_v27 = vpop.permute.xlu0 %477 }
 0x1fb   : > { %v546_v32 = vmul.f32 0.5, %v545_v24  ;;  %v499_v33 = vsub.f32 %v2484_v1, %v478_v27  ;;  %v1127_v35 = vpop.f32.mrf.mxu2  ;;  %v1280_v31 = vpop.f32.mrf.mxu3 }
 0x1fc   : > { %v517_v38 = vsub.f32 1.5, %v516_v26  ;;  %v2605_v26 = vadd.f32 %v1275_v59, %v1123_v58  ;;  %v988_v29 = vpop.f32.mrf.mxu1 }
 0x1fd   : > { %v507_v40 = vadd.f32 1e-05, %v499_v33  ;;  %v547_v41 = vsub.f32 1.5, %v546_v32  ;;  %v2608_v32 = vpop.f32.mrf.mxu0  ;;  %v2610_v33 = vadd.f32 %v1278_v13, %v1126_v21 }
 0x1fe   : > { %v518_v43 = vmul.f32 %v1971_v12, %v517_v38 }
 0x1ff   : > { %1974 = vrsqrt.f32 %v507_v40  ;;  %v548_v45 = vmul.f32 %v1973_v15, %v547_v41  ;;  %vm539_vm14 = vweird.f32 %v507_v40  ;;  %v1128_v41 = vadd.f32 %v1127_v35, %v988_v29 }
 0x200   : > { %v522_v47 = vsel %vm521_vm10, %v1971_v12, %v518_v43 }
 0x201   : > { %651 = vperm.xlu0 %1965, %v522_v47   ;;  %v552_v1 = vsel %vm551_vm12, %v1973_v15, %v548_v45  ;;  %v2612_v47 = vadd.f32 %v1280_v31, %v1128_v41 }
 0x202   : > { %666 = vperm.xlu2 %1966, %v552_v1  }
 0x203   : > { %v486_v50 = vpop.permute.xlu2 %485 }
 0x204   : > { %v503_v53 = vsub.f32 %v2514_v11, %v486_v50  ;;  %v991_v50 = vpop.f32.mrf.mxu1 }
 0x205   : > { %v1975_v57 = vpop.eup %1974  ;;  %v2614_v58 = vpop.f32.mrf.mxu0 }
 0x206   : > { %v534_v61 = vmul.f32 %v1975_v57, %v507_v40  ;;  %v511_v63 = vadd.f32 1e-05, %v503_v53  ;;  %vm540_vm13 = vweird.f32 %v1975_v57  ;;  %v1130_v53 = vpop.f32.mrf.mxu2 }
 0x207   : > { %vm541_vm15 = vmor %vm539_vm14, %vm540_vm13  ;;  %v1131_v31 = vadd.f32 %v1130_v53, %v991_v50 }
 0x208   : > { %v535_v0 = vmul.f32 %v1975_v57, %v534_v61  ;;  %1976 = vrsqrt.f32 %v511_v63  ;;  %vm579_vm1 = vweird.f32 %v511_v63 }
 0x20a   : > { %v536_v5 = vmul.f32 0.5, %v535_v0  ;;  %v482_v7 = vpop.permute.xlu1 %481 }
 0x20b   : > { %v501_v11 = vsub.f32 %v2499_v6, %v482_v7  ;;  %v601_v21 = vpop.permute.xlu2 %600 }
 0x20c   : > { %v537_v8 = vsub.f32 1.5, %v536_v5 }
 0x20d   : > { %v509_v12 = vadd.f32 1e-05, %v501_v11  ;;  %v993_v11 = vpop.f32.mrf.mxu1 }
 0x20e   : > { %v1977_v15 = vpop.eup %1976  ;;  %v538_v18 = vmul.f32 %v1975_v57, %v537_v8  ;;  %v1132_v8 = vpop.f32.mrf.mxu2 }
 0x20f   : > { %v574_v51 = vmul.f32 %v1977_v15, %v511_v63  ;;  %1978 = vrsqrt.f32 %v509_v12  ;;  %vm580_vm0 = vweird.f32 %v1977_v15  ;;  %vm559_vm4 = vweird.f32 %v509_v12 }
 0x210   : > { %v542_v19 = vsel %vm541_vm15, %v1975_v57, %v538_v18  ;;  %vm581_vm2 = vmor %vm579_vm1, %vm580_vm0  ;;  %v1283_v57 = vpop.f32.mrf.mxu3  ;;  %v2617_v18 = vpop.f32.mrf.mxu0 }
 0x211   : > { %v575_v20 = vmul.f32 %v1977_v15, %v574_v51  ;;  %661 = vperm.xlu1 %1967, %v542_v19  }
 0x212   : > { %v484_v24 = vpop.permute.xlu0 %483 }
 0x213   : > { %v576_v6 = vmul.f32 0.5, %v575_v20  ;;  %v502_v27 = vsub.f32 %v2509_v9, %v484_v24 }
 0x215   : > { %v1979_v38 = vpop.eup %1978  ;;  %v510_v39 = vadd.f32 1e-05, %v502_v27  ;;  %v577_v40 = vsub.f32 1.5, %v576_v6  ;;  %v996_v51 = vpop.f32.mrf.mxu1 }
 0x216   : > { %v554_v43 = vmul.f32 %v1979_v38, %v509_v12  ;;  %vm560_vm3 = vweird.f32 %v1979_v38  ;;  %v1135_v19 = vpop.f32.mrf.mxu2 }
 0x217   : > { %1980 = vrsqrt.f32 %v510_v39  ;;  %v578_v45 = vmul.f32 %v1977_v15, %v577_v40  ;;  %vm561_vm5 = vmor %vm559_vm4, %vm560_vm3  ;;  %vm569_vm7 = vweird.f32 %v510_v39 }
 0x218   : > { %v555_v1 = vmul.f32 %v1979_v38, %v554_v43  ;;  %v1285_v13 = vpop.f32.mrf.mxu3  ;;  %v2619_v27 = vpop.f32.mrf.mxu0 }
 0x219   : > { %v582_v9 = vsel %vm581_vm2, %v1977_v15, %v578_v45  ;;  %v611_v43 = vpop.permute.xlu2 %610 }
 0x21a   : > { %v556_v49 = vmul.f32 0.5, %v555_v1  ;;  %681 = vperm.xlu2 %1966, %v582_v9   ;;  %v1339_v9 = vadd.f32 %v1283_v57, %v1131_v31  ;;  %v636_v57 = vsub.f32 %v2414_v37, %v601_v21  ;;  %v1096_v37 = vadd.f32 %v2608_v32, %v2552_v30  ;;  %v2643_v31 = vpop.permute.xlu0 %595 }
 0x21b   : > { %v1098_v30 = vadd.f32 %v2614_v58, %v2563_v44 }
 0x21c   : > { %v557_v52 = vsub.f32 1.5, %v556_v49 }
 0x21d   : > { %v1981_v56 = vpop.eup %1980 }
 0x21e   : > { %v564_v59 = vmul.f32 %v1981_v56, %v510_v39  ;;  %v558_v61 = vmul.f32 %v1979_v38, %v557_v52  ;;  %vm570_vm6 = vweird.f32 %v1981_v56  ;;  %v1137_v39 = vpop.f32.mrf.mxu2 }
 0x21f   : > { %vm571_vm8 = vmor %vm569_vm7, %vm570_vm6 }
 0x220   : > { %v565_v63 = vmul.f32 %v1981_v56, %v564_v59  ;;  %v562_v0 = vsel %vm561_vm5, %v1979_v38, %v558_v61  ;;  %v998_v38 = vpop.f32.mrf.mxu1  ;;  %v1243_v1 = vpop.f32.mrf.mxu0 }
 0x221   : > { %671 = vperm.xlu1 %1967, %v562_v0   ;;  %v2621_v59 = vpop.permute.xlu2 %625 }
 0x222   : > { %v566_v2 = vmul.f32 0.5, %v565_v63  ;;  %v488_v5 = vpop.permute.xlu1 %487 }
 0x223   : > { %v504_v7 = vsub.f32 %v2526_v14, %v488_v5  ;;  %v1288_v14 = vpop.f32.mrf.mxu3  ;;  %v1136_v5 = vadd.f32 %v1135_v19, %v996_v51 }
 0x224   : > { %v567_v4 = vsub.f32 1.5, %v566_v2  ;;  %v1091_v2 = vadd.f32 %v2590_v46, %v2543_v17  ;;  %v1093_v17 = vadd.f32 %v2600_v3, %v2550_v25  ;;  %v640_v25 = vsub.f32 %v2400_v23, %v611_v43 }
 0x225   : > { %v512_v10 = vadd.f32 1e-05, %v504_v7 }
 0x226   : > { %v568_v15 = vmul.f32 %v1981_v56, %v567_v4  ;;  %v1140_v52 = vpop.f32.mrf.mxu2  ;;  %v1323_v50 = vadd.f32 %v1243_v1, %v1091_v2  ;;  %v635_v4 = vsub.f32 %v2411_v36, %v601_v21  ;;  %v1101_v1 = vadd.f32 %v2617_v18, %v2576_v62  ;;  %v1984_v18 = vld [vmem:[%s2366_s5] sm:$0xff] }
 0x227   : > { %1982 = vrsqrt.f32 %v512_v10  ;;  %vm589_vm10 = vweird.f32 %v512_v10 }
 0x228   : > { %v572_v12 = vsel %vm571_vm8, %v1981_v56, %v568_v15  ;;  %v1001_v49 = vpop.f32.mrf.mxu1  ;;  %v1133_v56 = vadd.f32 %v1132_v8, %v993_v11  ;;  %v1245_v0 = vpop.f32.mrf.mxu0 }
 0x229   : > { %676 = vperm.xlu0 %1965, %v572_v12   ;;  %v1138_v12 = vadd.f32 %v1137_v39, %v998_v38  ;;  %v1324_v51 = vadd.f32 %v1245_v0, %v1093_v17  ;;  %v1141_v21 = vadd.f32 %v1140_v52, %v1001_v49  ;;  %v1103_v0 = vadd.f32 %v2619_v27, %v2580_v16 }
 0x22a   : > { %v1340_v63 = vadd.f32 %v1285_v13, %v1133_v56  ;;  %v1341_v13 = vadd.f32 %v1288_v14, %v1136_v5 }
 0x22b   : > { %v1290_v45 = vpop.f32.mrf.mxu3 }
 0x22d   : > { %v1983_v20 = vpop.eup %1982 }
 0x22e   : > { %v584_v24 = vmul.f32 %v1983_v20, %v512_v10  ;;  %vm590_vm9 = vweird.f32 %v1983_v20  ;;  %v1142_v7 = vpop.f32.mrf.mxu2 }
 0x22f   : > { %vm591_vm11 = vmor %vm589_vm10, %vm590_vm9 }
 0x230   : > { %v585_v6 = vmul.f32 %v1983_v20, %v584_v24  ;;  %v1003_v53 = vpop.f32.mrf.mxu1  ;;  %v1248_v46 = vpop.f32.mrf.mxu0 }
 0x231   : > { %v1143_v32 = vadd.f32 %v1142_v7, %v1003_v53  ;;  %v633_v53 = vsub.f32 %v1984_v18, %v2643_v31  ;;  %v1985_v18 = vld [vmem:[%s2366_s5 + $0x8] sm:$0xff] }
 0x232   : > { %v586_v29 = vmul.f32 0.5, %v585_v6  ;;  %v1325_v6 = vadd.f32 %v1248_v46, %v1096_v37 }
 0x233   : > { %v1293_v61 = vpop.f32.mrf.mxu3 }
 0x234   : > { %v587_v35 = vsub.f32 1.5, %v586_v29  ;;  %v639_v29 = vsub.f32 %v2397_v22, %v611_v43 }
 0x236   : > { %v588_v40 = vmul.f32 %v1983_v20, %v587_v35  ;;  %v1145_v36 = vpop.f32.mrf.mxu2  ;;  %v1343_v35 = vadd.f32 %v1293_v61, %v1141_v21  ;;  %v2647_v61 = vpop.permute.xlu0 %620 }
 0x238   : > { %v592_v41 = vsel %vm591_vm11, %v1983_v20, %v588_v40  ;;  %v1006_v19 = vpop.f32.mrf.mxu1  ;;  %v1342_v20 = vadd.f32 %v1290_v45, %v1138_v12  ;;  %v1250_v14 = vpop.f32.mrf.mxu0 }
 0x239   : > { %686 = vperm.xlu1 %1967, %v592_v41   ;;  %v1326_v45 = vadd.f32 %v1250_v14, %v1098_v30  ;;  %v1146_v52 = vadd.f32 %v1145_v36, %v1006_v19 }
 0x23b   : > { %v1295_v15 = vpop.f32.mrf.mxu3 }
 0x23c   : > { %v1344_v43 = vadd.f32 %v1295_v15, %v1143_v32 }
 0x23e   : > { %v1147_v41 = vpop.f32.mrf.mxu2 }
 0x240   : > { %1387 = vxpose.xlu2.b32.start [1/16] %v1339_v9, 128  ;;  %v1008_v40 = vpop.f32.mrf.mxu1  ;;  %v1253_v23 = vpop.f32.mrf.mxu0 }
 0x241   : > { %v1327_v56 = vadd.f32 %v1253_v23, %v1101_v1  ;;  %v1148_v2 = vadd.f32 %v1147_v41, %v1008_v40 }
 0x243   : > { %v1298_v24 = vpop.f32.mrf.mxu3 }
 0x244   : > { %v1345_v58 = vadd.f32 %v1298_v24, %v1146_v52 }
 0x246   : > { %v1150_v49 = vpop.f32.mrf.mxu2 }
 0x248   : > { %1388 = vxpose.xlu2.b32.cont [2/16] %v1340_v63, 128  ;;  %v1011_v9 = vpop.f32.mrf.mxu1  ;;  %v1255_v63 = vpop.f32.mrf.mxu0 }
 0x249   : > { %v1328_v5 = vadd.f32 %v1255_v63, %v1103_v0 }
 0x24b   : > { %v657_v10 = vpop.permute.xlu2 %656  ;;  %1355 = vxpose.xlu0.b32.start [1/16] %v1323_v50, 128  ;;  %v1300_v22 = vpop.f32.mrf.mxu3 }
 0x24c   : > { %v2627_v11 = vmul.f32 %v657_v10, %v635_v4  ;;  %v2629_v8 = vmul.f32 %v657_v10, %v636_v57  ;;  %v1346_v57 = vadd.f32 %v1300_v22, %v1148_v2 }
 0x24e   : > { %v1152_v62 = vpop.f32.mrf.mxu2 }
 0x250   : > { %1389 = vxpose.xlu2.b32.cont [3/16] %v1341_v13, 128  ;;  %v1013_v50 = vpop.f32.mrf.mxu1  ;;  %v1151_v13 = vadd.f32 %v1150_v49, %v1011_v9 }
 0x251   : > { %v1153_v46 = vadd.f32 %v1152_v62, %v1013_v50 }
 0x253   : > { %1356 = vxpose.xlu0.b32.cont [2/16] %v1324_v51, 128  ;;  %v1303_v44 = vpop.f32.mrf.mxu3 }
 0x254   : > { %v1347_v15 = vadd.f32 %v1303_v44, %v1151_v13 }
 0x256   : > { %v1155_v27 = vpop.f32.mrf.mxu2 }
 0x258   : > { %1390 = vxpose.xlu2.b32.cont [4/16] %v1342_v20, 128  ;;  %v1016_v16 = vpop.f32.mrf.mxu1 }
 0x259   : > { %v1156_v36 = vadd.f32 %v1155_v27, %v1016_v16 }
 0x25b   : > { %1357 = vxpose.xlu0.b32.cont [3/16] %v1325_v6, 128  ;;  %v1305_v10 = vpop.f32.mrf.mxu3 }
 0x25c   : > { %v667_v3 = vpop.permute.xlu2 %666  ;;  %v1348_v12 = vadd.f32 %v1305_v10, %v1153_v46 }
 0x25d   : > { %v2637_v38 = vmul.f32 %v667_v3, %v639_v29  ;;  %v2639_v39 = vmul.f32 %v667_v3, %v640_v25 }
 0x25e   : > { %v1157_v19 = vpop.f32.mrf.mxu2 }
 0x260   : > { %1391 = vxpose.xlu2.b32.cont [5/16] %v1343_v35, 128  ;;  %v1018_v51 = vpop.f32.mrf.mxu1 }
 0x263   : > { %1358 = vxpose.xlu0.b32.cont [4/16] %v1326_v45, 128  ;;  %v1308_v17 = vpop.f32.mrf.mxu3 }
 0x264   : > { %v1349_v37 = vadd.f32 %v1308_v17, %v1156_v36 }
 0x266   : > { %v1160_v21 = vpop.f32.mrf.mxu2 }
 0x268   : > { %1392 = vxpose.xlu2.b32.cont [6/16] %v1344_v43, 128  ;;  %v1021_v24 = vpop.f32.mrf.mxu1 }
 0x269   : > { %v1161_v29 = vadd.f32 %v1160_v21, %v1021_v24 }
 0x26b   : > { %1359 = vxpose.xlu0.b32.cont [5/16] %v1327_v56, 128  ;;  %v1310_v20 = vpop.f32.mrf.mxu3 }
 0x26e   : > { %v1162_v25 = vpop.f32.mrf.mxu2 }
 0x270   : > { %1393 = vxpose.xlu2.b32.cont [7/16] %v1345_v58, 128 }
 0x273   : > { %v2653_v7 = vpop.permute.xlu0 %651  ;;  %1360 = vxpose.xlu0.b32.cont [6/16] %v1328_v5, 128  ;;  %v1313_v6 = vpop.f32.mrf.mxu3 }
 0x274   : > { %v2656_v4 = vmul.f32 %v2653_v7, %v633_v53  ;;  %v1351_v3 = vadd.f32 %v1313_v6, %v1161_v29  ;;  %v634_v53 = vsub.f32 %v1985_v18, %v2643_v31 }
 0x276   : > { %v1165_v41 = vpop.f32.mrf.mxu2 }
 0x278   : > { %1394 = vxpose.xlu2.b32.cont [8/16] %v1346_v57, 128  ;;  %v690_v57 = vmul.f32 %v2653_v7, %v634_v53 }
 0x27b   : > { %1361 = vxpose.xlu0.b32.cont [7/16] %v2559_v34, 128  ;;  %v1158_v34 = vadd.f32 %v1157_v19, %v1018_v51  ;;  %v1315_v35 = vpop.f32.mrf.mxu3  ;;  %v1986_v51 = vld [vmem:[%s2366_s5 + $0x28] sm:$0xff] }
 0x27d   : > { %v1350_v14 = vadd.f32 %v1310_v20, %v1158_v34 }
 0x27e   : > { %v1167_v23 = vpop.f32.mrf.mxu2 }
 0x280   : > { %1395 = vxpose.xlu2.b32.cont [9/16] %v1347_v15, 128 }
 0x283   : > { %1362 = vxpose.xlu0.b32.cont [8/16] %v2561_v42, 128  ;;  %v1023_v42 = vpop.f32.mrf.mxu1  ;;  %v1318_v32 = vpop.f32.mrf.mxu3 }
 0x284   : > { %v1163_v40 = vadd.f32 %v1162_v25, %v1023_v42 }
 0x286   : > { %v1352_v30 = vadd.f32 %v1315_v35, %v1163_v40 }
 0x288   : > { %1396 = vxpose.xlu2.b32.cont [10/16] %v1348_v12, 128 }
 0x28b   : > { %1363 = vxpose.xlu0.b32.cont [9/16] %v2569_v55, 128  ;;  %v1026_v55 = vpop.f32.mrf.mxu1 }
 0x290   : > { %1397 = vxpose.xlu2.b32.cont [11/16] %v1349_v37, 128 }
 0x293   : > { %1364 = vxpose.xlu0.b32.cont [10/16] %v2578_v60, 128  ;;  %v1166_v60 = vadd.f32 %v1165_v41, %v1026_v55  ;;  %v1028_v22 = vpop.f32.mrf.mxu1 }
 0x294   : > { %v1168_v43 = vadd.f32 %v1167_v23, %v1028_v22  ;;  %v1989_v22 = vld [vmem:[%s2366_s5 + $0x58] sm:$0xff] }
 0x295   : > { %v1353_v45 = vadd.f32 %v1318_v32, %v1166_v60  ;;  %v1988_v32 = vld [vmem:[%s2366_s5 + $0x20] sm:$0xff]  ;;  %v644_v23 = vsub.f32 %v1989_v22, %v2647_v61 }
 0x298   : > { %1398 = vxpose.xlu2.b32.cont [12/16] %v1350_v14, 128 }
 0x29b   : > { %1365 = vxpose.xlu0.b32.cont [11/16] %v2584_v28, 128  ;;  %v1320_v28 = vpop.f32.mrf.mxu3 }
 0x29c   : > { %v1354_v1 = vadd.f32 %v1320_v28, %v1168_v43 }
 0x2a0   : > { %1399 = vxpose.xlu2.b32.cont [13/16] %v1351_v3, 128  ;;  %v1987_v3 = vld [vmem:[%s2366_s5 + $0x48] sm:$0xff] }
 0x2a3   : > { %1366 = vxpose.xlu0.b32.cont [12/16] %v2592_v48, 128  ;;  %v2668_v48 = vpop.permute.xlu2 %681 }
 0x2a8   : > { %1400 = vxpose.xlu2.b32.cont [14/16] %v1352_v30, 128 }
 0x2ab   : > { %1367 = vxpose.xlu0.b32.cont [13/16] %v2595_v54, 128  ;;  %v2670_v54 = vpop.permute.xlu0 %676 }
 0x2ac   : > { %v700_v28 = vmul.f32 %v2670_v54, %v644_v23 }
 0x2b0   : > { %1401 = vxpose.xlu2.b32.cont [15/16] %v1353_v45, 128 }
 0x2b3   : > { %1368 = vxpose.xlu0.b32.cont [14/16] %v2605_v26, 128 }
 0x2b8   : > { %1402 = vxpose.xlu2.b32.end [16/16] %v1354_v1, 128 }
 0x2bb   : > { %1369 = vxpose.xlu0.b32.cont [15/16] %v2610_v33, 128  ;;  %v606_v33 = vpop.permute.xlu1 %605 }
 0x2bc   : > { %v638_v19 = vsub.f32 %v1986_v51, %v606_v33  ;;  %v637_v60 = vsub.f32 %v1988_v32, %v606_v33 }
 0x2c3   : > { %1370 = vxpose.xlu0.b32.end [16/16] %v2612_v47, 128  ;;  %v2680_v62 = vpop.permute.xlu1 %615 }
 0x2c4   : > { %v642_v35 = vsub.f32 %v1987_v3, %v2680_v62 }
 0x2cb   : > { %v2687_v15 = vpop.permute.xlu1 %630 }
 0x2d3   : > { %v662_v12 = vpop.permute.xlu1 %661 }
 0x2d4   : > { %v694_v36 = vmul.f32 %v662_v12, %v638_v19  ;;  %v693_v43 = vmul.f32 %v662_v12, %v637_v60  ;;  %v1993_v19 = vld [vmem:[%s2366_s5 + $0x50] sm:$0xff] }
 0x2d9   : > { %v1403_v9 = vpop.trf.xlu2 }
 0x2da   : > { %v1420_v13 = vmul.f32 %v1403_v9, %v690_v57  ;;  %v1991_v57 = vld [vmem:[%s2366_s5 + $0x40] sm:$0xff] }
 0x2db   : > { %v672_v25 = vpop.permute.xlu1 %671 }
 0x2dc   : > { %v698_v40 = vmul.f32 %v672_v25, %v642_v35 }
 0x2e1   : > { %v1404_v49 = vpop.trf.xlu2 }
 0x2e2   : > { %v1422_v31 = vmul.f32 %v1404_v49, %v2629_v8 }
 0x2e9   : > { %v1405_v52 = vpop.trf.xlu2 }
 0x2ea   : > { %v1424_v37 = vmul.f32 %v1405_v52, %v694_v36  ;;  %v643_v36 = vsub.f32 %v1993_v19, %v2647_v61 }
 0x2ef   : > { %v1371_v56 = vpop.trf.xlu0 }
 0x2f0   : > { %v1419_v34 = vmul.f32 %v1371_v56, %v2656_v4 }
 0x2f1   : > { %v1406_v44 = vpop.trf.xlu2 }
 0x2f2   : > { %v1426_v8 = vmul.f32 %v1406_v44, %v2639_v39  ;;  %v1990_v44 = vld [vmem:[%s2366_s5 + $0x68] sm:$0xff] }
 0x2f7   : > { %v1372_v58 = vpop.trf.xlu0 }
 0x2f8   : > { %v1421_v55 = vmul.f32 %v1372_v58, %v2627_v11  ;;  %v646_v58 = vsub.f32 %v1990_v44, %v2621_v59 }
 0x2f9   : > { %v1407_v63 = vpop.trf.xlu2 }
 0x2fa   : > { %v1428_v41 = vmul.f32 %v1407_v63, %v698_v40  ;;  %v702_v63 = vmul.f32 %v2668_v48, %v646_v58 }
 0x2ff   : > { %v1373_v0 = vpop.trf.xlu0 }
 0x300   : > { %v1423_v1 = vmul.f32 %v1373_v0, %v693_v43 }
 0x301   : > { %v1408_v26 = vpop.trf.xlu2 }
 0x302   : > { %v1430_v9 = vmul.f32 %v1408_v26, %v700_v28 }
 0x307   : > { %v2672_v2 = vpop.trf.xlu0 }
 0x308   : > { %v1425_v33 = vmul.f32 %v2672_v2, %v2637_v38 }
 0x309   : > { %v2674_v5 = vpop.trf.xlu2 }
 0x30a   : > { %v1432_v18 = vmul.f32 %v2674_v5, %v702_v63 }
 0x30f   : > { %v2676_v47 = vpop.trf.xlu0 }
 0x311   : > { %v2678_v50 = vpop.trf.xlu2 }
 0x317   : > { %v2685_v10 = vpop.trf.xlu0 }
 0x319   : > { %v1411_v16 = vpop.trf.xlu2 }
 0x31a   : > { %v1436_v27 = vadd.f32 %v1420_v13, %v1411_v16  ;;  %v641_v13 = vsub.f32 %v1991_v57, %v2680_v62 }
 0x31c   : > { %1452 = vst [vmem:[%s2691_s29 + $0x8] sm:$0xff] %v1436_v27  ;;  %v687_v27 = vpop.permute.xlu1 %686 }
 0x31f   : > { %v2694_v17 = vpop.trf.xlu0 }
 0x321   : > { %v1412_v46 = vpop.trf.xlu2 }
 0x322   : > { %v1438_v7 = vadd.f32 %v1422_v31, %v1412_v46  ;;  %v1992_v31 = vld [vmem:[%s2366_s5 + $0x78] sm:$0xff] }
 0x323   : > { %v648_v46 = vsub.f32 %v1992_v31, %v2687_v15 }
 0x324   : > { %1454 = vst [vmem:[%s2691_s29 + $0x18] sm:$0xff] %v1438_v7  ;;  %v697_v7 = vmul.f32 %v672_v25, %v641_v13 }
 0x325   : > { %v704_v38 = vmul.f32 %v687_v27, %v648_v46 }
 0x326   : > { %v1427_v2 = vmul.f32 %v2676_v47, %v697_v7 }
 0x327   : > { %v2699_v20 = vpop.trf.xlu0  ;;  %v1434_v12 = vmul.f32 %v2678_v50, %v704_v38 }
 0x329   : > { %v1413_v24 = vpop.trf.xlu2 }
 0x32a   : > { %v1440_v21 = vadd.f32 %v1424_v37, %v1413_v24  ;;  %v699_v24 = vmul.f32 %v2670_v54, %v643_v36 }
 0x32c   : > { %1456 = vst [vmem:[%s2691_s29 + $0x28] sm:$0xff] %v1440_v21  ;;  %v1429_v21 = vmul.f32 %v2685_v10, %v699_v24  ;;  %v1995_v10 = vld [vmem:[%s2366_s5 + $0x70] sm:$0xff] }
 0x32f   : > { %v1379_v6 = vpop.trf.xlu0 }
 0x330   : > { %v1435_v14 = vadd.f32 %v1419_v34, %v1379_v6  ;;  %v1994_v6 = vld [vmem:[%s2366_s5 + $0x60] sm:$0xff] }
 0x331   : > { %v1414_v29 = vpop.trf.xlu2  ;;  %v645_v50 = vsub.f32 %v1994_v6, %v2621_v59 }
 0x332   : > { %1451 = vst [vmem:[%s2691_s29] sm:$0xff] %v1435_v14  ;;  %v1442_v42 = vadd.f32 %v1426_v8, %v1414_v29  ;;  %v647_v29 = vsub.f32 %v1995_v10, %v2687_v15 }
 0x333   : > { %v701_v8 = vmul.f32 %v2668_v48, %v645_v50 }
 0x334   : > { %1458 = vst [vmem:[%s2691_s29 + $0x38] sm:$0xff] %v1442_v42  ;;  %v703_v59 = vmul.f32 %v687_v27, %v647_v29 }
 0x335   : > { %v1431_v61 = vmul.f32 %v2694_v17, %v701_v8 }
 0x336   : > { %v1433_v48 = vmul.f32 %v2699_v20, %v703_v59 }
 0x337   : > { %v1380_v4 = vpop.trf.xlu0 }
 0x338   : > { %v1437_v30 = vadd.f32 %v1421_v55, %v1380_v4 }
 0x339   : > { %v1415_v39 = vpop.trf.xlu2 }
 0x33a   : > { %1453 = vst [vmem:[%s2691_s29 + $0x10] sm:$0xff] %v1437_v30  ;;  %v1444_v45 = vadd.f32 %v1428_v41, %v1415_v39 }
 0x33c   : > { %1460 = vst [vmem:[%s2691_s29 + $0x48] sm:$0xff] %v1444_v45 }
 0x33f   : > { %v1381_v11 = vpop.trf.xlu0 }
 0x340   : > { %v1439_v49 = vadd.f32 %v1423_v1, %v1381_v11 }
 0x341   : > { %v1416_v52 = vpop.trf.xlu2 }
 0x342   : > { %1455 = vst [vmem:[%s2691_s29 + $0x20] sm:$0xff] %v1439_v49  ;;  %v1446_v56 = vadd.f32 %v1430_v9, %v1416_v52 }
 0x344   : > { %1462 = vst [vmem:[%s2691_s29 + $0x58] sm:$0xff] %v1446_v56 }
 0x347   : > { %v1382_v0 = vpop.trf.xlu0 }
 0x348   : > { %v1441_v26 = vadd.f32 %v1425_v33, %v1382_v0 }
 0x349   : > { %v1417_v53 = vpop.trf.xlu2 }
 0x34a   : > { %1457 = vst [vmem:[%s2691_s29 + $0x30] sm:$0xff] %v1441_v26  ;;  %v1448_v16 = vadd.f32 %v1432_v18, %v1417_v53 }
 0x34c   : > { %1464 = vst [vmem:[%s2691_s29 + $0x68] sm:$0xff] %v1448_v16 }
 0x34f   : > { %v1383_v5 = vpop.trf.xlu0 }
 0x350   : > { %v1443_v51 = vadd.f32 %v1427_v2, %v1383_v5 }
 0x351   : > { %v1418_v62 = vpop.trf.xlu2 }
 0x352   : > { %1459 = vst [vmem:[%s2691_s29 + $0x40] sm:$0xff] %v1443_v51  ;;  %v1450_v37 = vadd.f32 %v1434_v12, %v1418_v62 }
 0x354   : > { %1466 = vst [vmem:[%s2691_s29 + $0x78] sm:$0xff] %v1450_v37 }
 0x357   : > { %v1384_v47 = vpop.trf.xlu0 }
 0x358   : > { %v1445_v34 = vadd.f32 %v1429_v21, %v1384_v47 }
 0x35a   : > { %1461 = vst [vmem:[%s2691_s29 + $0x50] sm:$0xff] %v1445_v34 }
 0x35f   : > { %v1385_v14 = vpop.trf.xlu0 }
 0x360   : > { %v1447_v54 = vadd.f32 %v1431_v61, %v1385_v14 }
 0x362   : > { %1463 = vst [vmem:[%s2691_s29 + $0x60] sm:$0xff] %v1447_v54 }
 0x367   : > { %v1386_v17 = vpop.trf.xlu0 }
 0x368   : > { %v1449_v42 = vadd.f32 %v1433_v48, %v1386_v17 }
 0x36a   : > { %1465 = vst [vmem:[%s2691_s29 + $0x70] sm:$0xff] %v1449_v42 }
 0x36b   : > { %2143 = shalt.err (!%p2140_p9)
}
 0x36c   : > { %s2207_s11 = smov 256   ;;  %s2208_s5 = smov 16  }
 0x36d   : > { %1891 = dma.vmem_to_hbm [thread:$0]  (%p2306_p5), %s1481_s7, 2048, %s1483_s24, %s1468_s19, %s2207_s11, %s2207_s11, %s2208_s5  }
 0x36e PF: > { %s1497_s26 = sand.u32 1, %s2182_s15   ;;  %p2802_p12 = scmp.ge.s32.totalorder %s2194_s18, 2 }
 0x36f   : > { %s1498_s10 = scalar_lea.sflag [#allocation4], %s1497_s26 }
 0x370   : > { %p1908_p13 = pnand %p2802_p12, %p2269_p6 }
 0x372   : > { %p1909_p0 = pneg %p1908_p13 }
 0x374   : > { %2177 = dma.done.wait (%p1909_p0), %s1498_s10, 2048  }
 0x375   : > { %2179 = vsyncadd (%p1909_p0), %s1498_s10, 4294965248  ;;  %s2803_s25 = sld [smem:[#allocation16_spill]]  ;;  %p21_p3 = scmp.ge.s32.totalorder %s2293_s12, 4  }
 0x376   : > { %s2804_s15 = smov %s2186_s16  ;;  %s2805_s16 = smov %s2190_s17 }
 0x377   : > { %s2807_s18 = smov %s2293_s12  ;;  %23 = sbr.rel (!%p21_p3) target bundleno = 12 (0xc), region = 104 }
 0x37b   : > { %s2806_s17 = smov %s2803_s25 }
 0x37c   :  { %1504 = vsyncpa [#allocation3], 1 }
 0x37d   :  { %1506 = vsyncpa [#allocation3 + $0x1], 1 }
 0x37e   :  { %1507 = vsyncpa [#allocation6], 1 }
 0x37f   :  { %1509 = vsyncpa [#allocation6 + $0x1], 1 }
 0x380   :  { %1510 = vsyncpa [#allocation9], 1 }
 0x381   :  { %1511 = vsyncpa [#allocation4], 1 }
 0x382   :  { %1513 = vsyncpa [#allocation4 + $0x1], 1 }

</bundles_post_ra>
